<compile_context>
chip_gen: v5e
topology: v5e:2x2
jax: 0.10.0
libtpu: 0.0.40
codegen_flags: <defaults>
</compile_context>

<pallas_src>
import jax
import jax.numpy as jnp
from jax import lax
from jax.experimental import pallas as pl
from jax.experimental.pallas import tpu as pltpu


def _down_kernel(x_ref, w1_ref, b1_ref, a1_ref, w2_ref, b2_ref, a2_ref,
                 out_ref, pad1_ref, pad2_ref):
    Bt, Hp, _, Wp, two_cin = x_ref.shape
    cin = two_cin // 2
    cmid = w1_ref.shape[1]
    M = Bt * Hp * Wp

    # ---- MaxPool2d(2): in-kernel 4-way max over the 2x2 window ---------------
    # x_ref is a free reshape of NHWC: dim 2 = row parity, last dim packs
    # (col parity, channel) so the column-pair max is a lane-half max.
    xv = x_ref[...]                                   # (Bt, Hp, 2, Wp, 2*Cin)
    rmax = jnp.maximum(xv[:, :, 0, :, :], xv[:, :, 1, :, :])  # (Bt,Hp,Wp,2*Cin)
    pooled = jnp.maximum(rmax[..., :cin], rmax[..., cin:])    # (Bt,Hp,Wp,Cin)

    # ---- conv1: halo-zero, interior store, im2col, one wide-K bf16 matmul ----
    # Only the 1-pixel halo needs zeros; the interior is fully overwritten.
    zr1 = jnp.zeros((Bt, 1, Wp + 2, cin), jnp.float32)
    zc1 = jnp.zeros((Bt, Hp + 2, 1, cin), jnp.float32)
    pad1_ref[:, 0:1, :, :] = zr1
    pad1_ref[:, Hp + 1:Hp + 2, :, :] = zr1
    pad1_ref[:, :, 0:1, :] = zc1
    pad1_ref[:, :, Wp + 1:Wp + 2, :] = zc1
    pad1_ref[:, 1:Hp + 1, 1:Wp + 1, :] = pooled       # single bulk interior store

    cols1 = jnp.concatenate(
        [pad1_ref[:, dy:dy + Hp, dx:dx + Wp, :]
         for dy in range(3) for dx in range(3)], axis=-1)     # (Bt,Hp,Wp,9*Cin)
    h1 = jnp.dot(cols1.reshape(M, 9 * cin).astype(jnp.bfloat16), w1_ref[...],
                 preferred_element_type=jnp.float32)          # (M, Cmid) f32
    h1 = h1 + b1_ref[...]                 # BN scale folded into w1; bias only
    h1 = jnp.where(h1 > 0, h1, a1_ref[0] * h1)        # PReLU (shared alpha)

    # ---- conv2: same structure -----------------------------------------------
    zr2 = jnp.zeros((Bt, 1, Wp + 2, cmid), jnp.float32)
    zc2 = jnp.zeros((Bt, Hp + 2, 1, cmid), jnp.float32)
    pad2_ref[:, 0:1, :, :] = zr2
    pad2_ref[:, Hp + 1:Hp + 2, :, :] = zr2
    pad2_ref[:, :, 0:1, :] = zc2
    pad2_ref[:, :, Wp + 1:Wp + 2, :] = zc2
    pad2_ref[:, 1:Hp + 1, 1:Wp + 1, :] = h1.reshape(Bt, Hp, Wp, cmid)

    cols2 = jnp.concatenate(
        [pad2_ref[:, dy:dy + Hp, dx:dx + Wp, :]
         for dy in range(3) for dx in range(3)], axis=-1)     # (Bt,Hp,Wp,9*Cmid)
    h2 = jnp.dot(cols2.reshape(M, 9 * cmid).astype(jnp.bfloat16), w2_ref[...],
                 preferred_element_type=jnp.float32)          # (M, Cout) f32
    h2 = h2 + b2_ref[...]
    h2 = jnp.where(h2 > 0, h2, a2_ref[0] * h2)

    # Lane-dense for production Cout >= 128; toy Cout < 128 left as TODO above.
    out_ref[...] = h2.astype(out_ref.dtype)           # single dense store


def down_pallas(x_nchw, params, eps=1e-5, bt=None):
    B, Cin, H, W = x_nchw.shape
    assert H % 2 == 0 and W % 2 == 0, "MaxPool2d(2) needs even spatial dims"
    Hp, Wp = H // 2, W // 2
    # Keep the spatial-flatten reshapes layout-preserving (f32 sublane tile = 8).
    # TODO(synk): pad Wp up to a multiple of 8 to support arbitrary widths.
    assert Wp % 8 == 0, "W must be a multiple of 16 in this implementation"
    Cmid = params["w1"].shape[0]
    Cout = params["w2"].shape[0]

    if bt is None:
        bt = 1          # >= 2 grid steps: DMA/compute overlap + both v7x cores
    assert B % bt == 0

    # NCHW -> NHWC (glue), then a *free* reshape exposing the 2x2 pooling window
    # as (row parity, col-parity*channel): (B, Hp, 2, Wp, 2*Cin).
    x = jnp.transpose(x_nchw, (0, 2, 3, 1)).astype(jnp.float32)
    x5 = x.reshape(B, Hp, 2, Wp, 2 * Cin)

    # Fold conv bias + eval-mode BatchNorm: scale goes into the weight columns,
    # leaving only a bias add (+ PReLU) in the kernel.  MXU operands -> bf16.
    s1 = params["bn1_gamma"] / jnp.sqrt(params["bn1_var"] + eps)
    b1 = (params["b1"] - params["bn1_mean"]) * s1 + params["bn1_beta"]
    s2 = params["bn2_gamma"] / jnp.sqrt(params["bn2_var"] + eps)
    b2 = (params["b2"] - params["bn2_mean"]) * s2 + params["bn2_beta"]

    # conv weights (O, I, 3, 3) -> (9*I, O), row index (dy*3+dx)*I + i
    w1 = jnp.transpose(params["w1"], (2, 3, 1, 0)).reshape(9 * Cin, Cmid)
    w2 = jnp.transpose(params["w2"], (2, 3, 1, 0)).reshape(9 * Cmid, Cout)
    w1 = (w1 * s1[None, :]).astype(jnp.bfloat16)
    w2 = (w2 * s2[None, :]).astype(jnp.bfloat16)

    b1 = b1.reshape(1, Cmid).astype(jnp.float32)
    b2 = b2.reshape(1, Cout).astype(jnp.float32)
    a1 = params["prelu1"].reshape(1).astype(jnp.float32)
    a2 = params["prelu2"].reshape(1).astype(jnp.float32)

    smem_spec = pl.BlockSpec(memory_space=pltpu.MemorySpace.SMEM)

    out_flat = pl.pallas_call(
        _down_kernel,
        out_shape=jax.ShapeDtypeStruct((B * Hp * Wp, Cout), jnp.float32),
        grid=(B // bt,),
        in_specs=[
            pl.BlockSpec((bt, Hp, 2, Wp, 2 * Cin), lambda i: (i, 0, 0, 0, 0)),
            pl.BlockSpec((9 * Cin, Cmid), lambda i: (0, 0)),
            pl.BlockSpec((1, Cmid), lambda i: (0, 0)),
            smem_spec,
            pl.BlockSpec((9 * Cmid, Cout), lambda i: (0, 0)),
            pl.BlockSpec((1, Cout), lambda i: (0, 0)),
            smem_spec,
        ],
        out_specs=pl.BlockSpec((bt * Hp * Wp, Cout), lambda i: (i, 0)),
        scratch_shapes=[
            pltpu.VMEM((bt, Hp + 2, Wp + 2, Cin), jnp.float32),
            pltpu.VMEM((bt, Hp + 2, Wp + 2, Cmid), jnp.float32),
        ],
        compiler_params=pltpu.CompilerParams(
            dimension_semantics=("parallel",),
            vmem_limit_bytes=32 * 1024 * 1024),
    )(x5, w1, b1, a1, w2, b2, a2)

    # (B*Hp*Wp, Cout) -> NHWC -> NCHW (wrapper glue)
    out_nhwc = out_flat.reshape(B, Hp, Wp, Cout)
    return jnp.transpose(out_nhwc, (0, 3, 1, 2))


def init_params(key, in_channels, out_channels):
    mid = out_channels
    ks = jax.random.split(key, 12)

    def norm(k, shape, scale):
        return scale * jax.random.normal(k, shape, jnp.float32)

    return {
        "w1": norm(ks[0], (mid, in_channels, 3, 3), 0.2),
        "b1": norm(ks[1], (mid,), 0.1),
        "bn1_gamma": 1.0 + 0.1 * jax.random.normal(ks[2], (mid,), jnp.float32),
        "bn1_beta": norm(ks[3], (mid,), 0.1),
        "bn1_mean": norm(ks[4], (mid,), 0.1),
        "bn1_var": 1.0 + 0.1 * jax.random.uniform(ks[5], (mid,), jnp.float32),
        "prelu1": jnp.array(0.25, jnp.float32),
        "w2": norm(ks[6], (out_channels, mid, 3, 3), 0.2),
        "b2": norm(ks[7], (out_channels,), 0.1),
        "bn2_gamma": 1.0 + 0.1 * jax.random.normal(ks[8], (out_channels,), jnp.float32),
        "bn2_beta": norm(ks[9], (out_channels,), 0.1),
        "bn2_mean": norm(ks[10], (out_channels,), 0.1),
        "bn2_var": 1.0 + 0.1 * jax.random.uniform(ks[11], (out_channels,), jnp.float32),
        "prelu2": jnp.array(0.25, jnp.float32),
    }


def down_reference(x, p, eps=1e-5):
    """Pure-JAX reference (NCHW), eval-mode BatchNorm, f32 HIGHEST precision."""
    y = lax.reduce_window(x, -jnp.inf, lax.max,
                          window_dimensions=(1, 1, 2, 2),
                          window_strides=(1, 1, 2, 2), padding="VALID")

    def conv_bn_prelu(y, w, b, gamma, beta, mean, var, alpha):
        y = lax.conv_general_dilated(
            y, w, window_strides=(1, 1), padding=((1, 1), (1, 1)),
            dimension_numbers=("NCHW", "OIHW", "NCHW"),
            precision=lax.Precision.HIGHEST)
        y = y + b[None, :, None, None]
        y = (y - mean[None, :, None, None]) / jnp.sqrt(var[None, :, None, None] + eps)
        y = y * gamma[None, :, None, None] + beta[None, :, None, None]
        return jnp.where(y > 0, y, alpha * y)

    y = conv_bn_prelu(y, p["w1"], p["b1"], p["bn1_gamma"], p["bn1_beta"],
                      p["bn1_mean"], p["bn1_var"], p["prelu1"])
    y = conv_bn_prelu(y, p["w2"], p["b2"], p["bn2_gamma"], p["bn2_beta"],
                      p["bn2_mean"], p["bn2_var"], p["prelu2"])
    return y


if __name__ == "__main__":
    key = jax.random.PRNGKey(0)
    kx, kp = jax.random.split(key)

    B, Cin, H, W = 2, 4, 16, 16     # input x: NCHW
    Cout = 8

    x = jax.random.normal(kx, (B, Cin, H, W), jnp.float32)
    params = init_params(kp, Cin, Cout)

    out = jax.block_until_ready(jax.jit(down_pallas)(x, params))
    ref = jax.block_until_ready(down_reference(x, params))

    assert out.shape == (B, Cout, H // 2, W // 2), out.shape
    err = float(jnp.max(jnp.abs(out - ref)))
    # Tolerance accounts for bf16 MXU operands (K=36 and K=72 contractions,
    # f32 accumulation) vs. the f32 Precision.HIGHEST reference; structural
    # bugs (tap misalignment, missing bias/BN/PReLU) would be O(0.1-1).
    assert err < 8e-2, f"max abs error too large: {err}"
    print("KERNEL_OK")
</pallas_src>

<mosaic_0001>
module attributes {stable_mosaic.version = 11 : i64} {
  func.func @_down_kernel(%arg0: i32, %arg1: memref<1x8x2x8x8xf32, #tpu.memory_space<vmem>>, %arg2: memref<36x8xbf16, #tpu.memory_space<vmem>>, %arg3: memref<1x8xf32, #tpu.memory_space<vmem>>, %arg4: memref<1xf32, #tpu.memory_space<smem>>, %arg5: memref<72x8xbf16, #tpu.memory_space<vmem>>, %arg6: memref<1x8xf32, #tpu.memory_space<vmem>>, %arg7: memref<1xf32, #tpu.memory_space<smem>>, %arg8: memref<64x8xf32, #tpu.memory_space<vmem>>, %arg9: memref<1x10x10x4xf32, #tpu.memory_space<vmem>>, %arg10: memref<1x10x10x8xf32, #tpu.memory_space<vmem>>) attributes {dimension_semantics = [#tpu.dimension_semantics<parallel>], iteration_bounds = array<i64: 2>, scalar_prefetch = 0 : i64, scratch_operands = 2 : i64, tpu.core_type = #tpu.core_type<tc>, window_params = [{transform_indices = @transform_0, window_bounds = array<i64: 1, 8, 2, 8, 8>}, {pipeline_mode = #tpu.pipeline_mode<synchronous>, transform_indices = @transform_1, window_bounds = array<i64: 36, 8>}, {pipeline_mode = #tpu.pipeline_mode<synchronous>, transform_indices = @transform_2, window_bounds = array<i64: 1, 8>}, {transform_indices = @transform_3, window_bounds = array<i64: 1>}, {pipeline_mode = #tpu.pipeline_mode<synchronous>, transform_indices = @transform_4, window_bounds = array<i64: 72, 8>}, {pipeline_mode = #tpu.pipeline_mode<synchronous>, transform_indices = @transform_5, window_bounds = array<i64: 1, 8>}, {transform_indices = @transform_6, window_bounds = array<i64: 1>}, {transform_indices = @transform_7, window_bounds = array<i64: 64, 8>}]} {
    %c0 = arith.constant 0 : index
    %c0_0 = arith.constant 0 : index
    %c0_1 = arith.constant 0 : index
    %c0_2 = arith.constant 0 : index
    %c0_3 = arith.constant 0 : index
    %0 = vector.load %arg1[%c0, %c0_0, %c0_1, %c0_2, %c0_3] : memref<1x8x2x8x8xf32, #tpu.memory_space<vmem>>, vector<1x8x2x8x8xf32>
    %1 = vector.extract_strided_slice %0 {offsets = [0, 0, 0, 0, 0], sizes = [1, 8, 1, 8, 8], strides = [1, 1, 1, 1, 1]} : vector<1x8x2x8x8xf32> to vector<1x8x1x8x8xf32>
    %2 = vector.shape_cast %1 : vector<1x8x1x8x8xf32> to vector<1x8x8x8xf32>
    %3 = vector.extract_strided_slice %0 {offsets = [0, 0, 1, 0, 0], sizes = [1, 8, 1, 8, 8], strides = [1, 1, 1, 1, 1]} : vector<1x8x2x8x8xf32> to vector<1x8x1x8x8xf32>
    %4 = vector.shape_cast %3 : vector<1x8x1x8x8xf32> to vector<1x8x8x8xf32>
    %5 = arith.maximumf %2, %4 : vector<1x8x8x8xf32>
    %6 = vector.extract_strided_slice %5 {offsets = [0, 0, 0, 0], sizes = [1, 8, 8, 4], strides = [1, 1, 1, 1]} : vector<1x8x8x8xf32> to vector<1x8x8x4xf32>
    %7 = vector.extract_strided_slice %5 {offsets = [0, 0, 0, 4], sizes = [1, 8, 8, 4], strides = [1, 1, 1, 1]} : vector<1x8x8x8xf32> to vector<1x8x8x4xf32>
    %8 = arith.maximumf %6, %7 : vector<1x8x8x4xf32>
    %cst = arith.constant 0.000000e+00 : f32
    %9 = vector.broadcast %cst : f32 to vector<1x1x10x4xf32>
    %cst_4 = arith.constant 0.000000e+00 : f32
    %10 = vector.broadcast %cst_4 : f32 to vector<1x10x1x4xf32>
    %c0_5 = arith.constant 0 : index
    %c0_6 = arith.constant 0 : index
    %c0_7 = arith.constant 0 : index
    %c0_8 = arith.constant 0 : index
    %11 = vector.load %arg9[%c0_5, %c0_6, %c0_7, %c0_8] : memref<1x10x10x4xf32, #tpu.memory_space<vmem>>, vector<1x1x10x4xf32>
    tpu.vector_store %arg9[%c0_5, %c0_6, %c0_7, %c0_8], %9 {strides = array<i32>} : memref<1x10x10x4xf32, #tpu.memory_space<vmem>>, vector<1x1x10x4xf32>,
    %c0_9 = arith.constant 0 : index
    %c9 = arith.constant 9 : index
    %c0_10 = arith.constant 0 : index
    %c0_11 = arith.constant 0 : index
    %12 = vector.load %arg9[%c0_9, %c9, %c0_10, %c0_11] : memref<1x10x10x4xf32, #tpu.memory_space<vmem>>, vector<1x1x10x4xf32>
    tpu.vector_store %arg9[%c0_9, %c9, %c0_10, %c0_11], %9 {strides = array<i32>} : memref<1x10x10x4xf32, #tpu.memory_space<vmem>>, vector<1x1x10x4xf32>,
    %c0_12 = arith.constant 0 : index
    %c0_13 = arith.constant 0 : index
    %c0_14 = arith.constant 0 : index
    %c0_15 = arith.constant 0 : index
    %13 = vector.load %arg9[%c0_12, %c0_13, %c0_14, %c0_15] : memref<1x10x10x4xf32, #tpu.memory_space<vmem>>, vector<1x10x1x4xf32>
    tpu.vector_store %arg9[%c0_12, %c0_13, %c0_14, %c0_15], %10 {strides = array<i32>} : memref<1x10x10x4xf32, #tpu.memory_space<vmem>>, vector<1x10x1x4xf32>,
    %c0_16 = arith.constant 0 : index
    %c0_17 = arith.constant 0 : index
    %c9_18 = arith.constant 9 : index
    %c0_19 = arith.constant 0 : index
    %14 = vector.load %arg9[%c0_16, %c0_17, %c9_18, %c0_19] : memref<1x10x10x4xf32, #tpu.memory_space<vmem>>, vector<1x10x1x4xf32>
    tpu.vector_store %arg9[%c0_16, %c0_17, %c9_18, %c0_19], %10 {strides = array<i32>} : memref<1x10x10x4xf32, #tpu.memory_space<vmem>>, vector<1x10x1x4xf32>,
    %c0_20 = arith.constant 0 : index
    %c1 = arith.constant 1 : index
    %c1_21 = arith.constant 1 : index
    %c0_22 = arith.constant 0 : index
    %15 = vector.load %arg9[%c0_20, %c1, %c1_21, %c0_22] : memref<1x10x10x4xf32, #tpu.memory_space<vmem>>, vector<1x8x8x4xf32>
    tpu.vector_store %arg9[%c0_20, %c1, %c1_21, %c0_22], %8 {strides = array<i32>} : memref<1x10x10x4xf32, #tpu.memory_space<vmem>>, vector<1x8x8x4xf32>,
    %c0_23 = arith.constant 0 : index
    %c0_24 = arith.constant 0 : index
    %c0_25 = arith.constant 0 : index
    %c0_26 = arith.constant 0 : index
    %16 = vector.load %arg9[%c0_23, %c0_24, %c0_25, %c0_26] : memref<1x10x10x4xf32, #tpu.memory_space<vmem>>, vector<1x8x8x4xf32>
    %c0_27 = arith.constant 0 : index
    %c0_28 = arith.constant 0 : index
    %c1_29 = arith.constant 1 : index
    %c0_30 = arith.constant 0 : index
    %17 = vector.load %arg9[%c0_27, %c0_28, %c1_29, %c0_30] : memref<1x10x10x4xf32, #tpu.memory_space<vmem>>, vector<1x8x8x4xf32>
    %c0_31 = arith.constant 0 : index
    %c0_32 = arith.constant 0 : index
    %c2 = arith.constant 2 : index
    %c0_33 = arith.constant 0 : index
    %18 = vector.load %arg9[%c0_31, %c0_32, %c2, %c0_33] : memref<1x10x10x4xf32, #tpu.memory_space<vmem>>, vector<1x8x8x4xf32>
    %c0_34 = arith.constant 0 : index
    %c1_35 = arith.constant 1 : index
    %c0_36 = arith.constant 0 : index
    %c0_37 = arith.constant 0 : index
    %19 = vector.load %arg9[%c0_34, %c1_35, %c0_36, %c0_37] : memref<1x10x10x4xf32, #tpu.memory_space<vmem>>, vector<1x8x8x4xf32>
    %c0_38 = arith.constant 0 : index
    %c1_39 = arith.constant 1 : index
    %c1_40 = arith.constant 1 : index
    %c0_41 = arith.constant 0 : index
    %20 = vector.load %arg9[%c0_38, %c1_39, %c1_40, %c0_41] : memref<1x10x10x4xf32, #tpu.memory_space<vmem>>, vector<1x8x8x4xf32>
    %c0_42 = arith.constant 0 : index
    %c1_43 = arith.constant 1 : index
    %c2_44 = arith.constant 2 : index
    %c0_45 = arith.constant 0 : index
    %21 = vector.load %arg9[%c0_42, %c1_43, %c2_44, %c0_45] : memref<1x10x10x4xf32, #tpu.memory_space<vmem>>, vector<1x8x8x4xf32>
    %c0_46 = arith.constant 0 : index
    %c2_47 = arith.constant 2 : index
    %c0_48 = arith.constant 0 : index
    %c0_49 = arith.constant 0 : index
    %22 = vector.load %arg9[%c0_46, %c2_47, %c0_48, %c0_49] : memref<1x10x10x4xf32, #tpu.memory_space<vmem>>, vector<1x8x8x4xf32>
    %c0_50 = arith.constant 0 : index
    %c2_51 = arith.constant 2 : index
    %c1_52 = arith.constant 1 : index
    %c0_53 = arith.constant 0 : index
    %23 = vector.load %arg9[%c0_50, %c2_51, %c1_52, %c0_53] : memref<1x10x10x4xf32, #tpu.memory_space<vmem>>, vector<1x8x8x4xf32>
    %c0_54 = arith.constant 0 : index
    %c2_55 = arith.constant 2 : index
    %c2_56 = arith.constant 2 : index
    %c0_57 = arith.constant 0 : index
    %24 = vector.load %arg9[%c0_54, %c2_55, %c2_56, %c0_57] : memref<1x10x10x4xf32, #tpu.memory_space<vmem>>, vector<1x8x8x4xf32>
    %25 = tpu.concatenate %16, %17, %18, %19, %20, %21, %22, %23, %24 in 3 : vector<1x8x8x4xf32>, vector<1x8x8x4xf32>, vector<1x8x8x4xf32>, vector<1x8x8x4xf32>, vector<1x8x8x4xf32>, vector<1x8x8x4xf32>, vector<1x8x8x4xf32>, vector<1x8x8x4xf32>, vector<1x8x8x4xf32> -> vector<1x8x8x36xf32>
    %26 = vector.shape_cast %25 : vector<1x8x8x36xf32> to vector<64x36xf32>
    %27 = arith.truncf %26 : vector<64x36xf32> to vector<64x36xbf16>
    %c0_58 = arith.constant 0 : index
    %c0_59 = arith.constant 0 : index
    %28 = vector.load %arg2[%c0_58, %c0_59] : memref<36x8xbf16, #tpu.memory_space<vmem>>, vector<36x8xbf16>
    %cst_60 = arith.constant dense<0.000000e+00> : vector<64x8xf32>
    %29 = tpu.matmul %27, %28, %cst_60 {dimension_numbers = #tpu.dot_dimension_numbers<[1], [0], [0], [1], [0, 0, 1, 1], [], []>} : vector<64x36xbf16>, vector<36x8xbf16>, vector<64x8xf32> -> vector<64x8xf32>
    %c0_61 = arith.constant 0 : index
    %c0_62 = arith.constant 0 : index
    %30 = vector.load %arg3[%c0_61, %c0_62] : memref<1x8xf32, #tpu.memory_space<vmem>>, vector<1x8xf32>
    %31 = vector.broadcast %30 : vector<1x8xf32> to vector<64x8xf32>
    %32 = arith.addf %29, %31 : vector<64x8xf32>
    %cst_63 = arith.constant 0.000000e+00 : f32
    %33 = vector.broadcast %cst_63 : f32 to vector<64x8xf32>
    %34 = arith.cmpf ogt, %32, %33 : vector<64x8xf32>
    %c0_64 = arith.constant 0 : index
    %35 = memref.load %arg4[%c0_64] : memref<1xf32, #tpu.memory_space<smem>>
    %36 = vector.broadcast %35 : f32 to vector<64x8xf32>
    %37 = arith.mulf %36, %32 : vector<64x8xf32>
    %38 = arith.select %34, %32, %37 : vector<64x8xi1>, vector<64x8xf32>
    %cst_65 = arith.constant 0.000000e+00 : f32
    %39 = vector.broadcast %cst_65 : f32 to vector<1x1x10x8xf32>
    %cst_66 = arith.constant 0.000000e+00 : f32
    %40 = vector.broadcast %cst_66 : f32 to vector<1x10x1x8xf32>
    %c0_67 = arith.constant 0 : index
    %c0_68 = arith.constant 0 : index
    %c0_69 = arith.constant 0 : index
    %c0_70 = arith.constant 0 : index
    %41 = vector.load %arg10[%c0_67, %c0_68, %c0_69, %c0_70] : memref<1x10x10x8xf32, #tpu.memory_space<vmem>>, vector<1x1x10x8xf32>
    tpu.vector_store %arg10[%c0_67, %c0_68, %c0_69, %c0_70], %39 {strides = array<i32>} : memref<1x10x10x8xf32, #tpu.memory_space<vmem>>, vector<1x1x10x8xf32>,
    %c0_71 = arith.constant 0 : index
    %c9_72 = arith.constant 9 : index
    %c0_73 = arith.constant 0 : index
    %c0_74 = arith.constant 0 : index
    %42 = vector.load %arg10[%c0_71, %c9_72, %c0_73, %c0_74] : memref<1x10x10x8xf32, #tpu.memory_space<vmem>>, vector<1x1x10x8xf32>
    tpu.vector_store %arg10[%c0_71, %c9_72, %c0_73, %c0_74], %39 {strides = array<i32>} : memref<1x10x10x8xf32, #tpu.memory_space<vmem>>, vector<1x1x10x8xf32>,
    %c0_75 = arith.constant 0 : index
    %c0_76 = arith.constant 0 : index
    %c0_77 = arith.constant 0 : index
    %c0_78 = arith.constant 0 : index
    %43 = vector.load %arg10[%c0_75, %c0_76, %c0_77, %c0_78] : memref<1x10x10x8xf32, #tpu.memory_space<vmem>>, vector<1x10x1x8xf32>
    tpu.vector_store %arg10[%c0_75, %c0_76, %c0_77, %c0_78], %40 {strides = array<i32>} : memref<1x10x10x8xf32, #tpu.memory_space<vmem>>, vector<1x10x1x8xf32>,
    %c0_79 = arith.constant 0 : index
    %c0_80 = arith.constant 0 : index
    %c9_81 = arith.constant 9 : index
    %c0_82 = arith.constant 0 : index
    %44 = vector.load %arg10[%c0_79, %c0_80, %c9_81, %c0_82] : memref<1x10x10x8xf32, #tpu.memory_space<vmem>>, vector<1x10x1x8xf32>
    tpu.vector_store %arg10[%c0_79, %c0_80, %c9_81, %c0_82], %40 {strides = array<i32>} : memref<1x10x10x8xf32, #tpu.memory_space<vmem>>, vector<1x10x1x8xf32>,
    %45 = vector.shape_cast %38 : vector<64x8xf32> to vector<1x8x8x8xf32>
    %c0_83 = arith.constant 0 : index
    %c1_84 = arith.constant 1 : index
    %c1_85 = arith.constant 1 : index
    %c0_86 = arith.constant 0 : index
    %46 = vector.load %arg10[%c0_83, %c1_84, %c1_85, %c0_86] : memref<1x10x10x8xf32, #tpu.memory_space<vmem>>, vector<1x8x8x8xf32>
    tpu.vector_store %arg10[%c0_83, %c1_84, %c1_85, %c0_86], %45 {strides = array<i32>} : memref<1x10x10x8xf32, #tpu.memory_space<vmem>>, vector<1x8x8x8xf32>,
    %c0_87 = arith.constant 0 : index
    %c0_88 = arith.constant 0 : index
    %c0_89 = arith.constant 0 : index
    %c0_90 = arith.constant 0 : index
    %47 = vector.load %arg10[%c0_87, %c0_88, %c0_89, %c0_90] : memref<1x10x10x8xf32, #tpu.memory_space<vmem>>, vector<1x8x8x8xf32>
    %c0_91 = arith.constant 0 : index
    %c0_92 = arith.constant 0 : index
    %c1_93 = arith.constant 1 : index
    %c0_94 = arith.constant 0 : index
    %48 = vector.load %arg10[%c0_91, %c0_92, %c1_93, %c0_94] : memref<1x10x10x8xf32, #tpu.memory_space<vmem>>, vector<1x8x8x8xf32>
    %c0_95 = arith.constant 0 : index
    %c0_96 = arith.constant 0 : index
    %c2_97 = arith.constant 2 : index
    %c0_98 = arith.constant 0 : index
    %49 = vector.load %arg10[%c0_95, %c0_96, %c2_97, %c0_98] : memref<1x10x10x8xf32, #tpu.memory_space<vmem>>, vector<1x8x8x8xf32>
    %c0_99 = arith.constant 0 : index
    %c1_100 = arith.constant 1 : index
    %c0_101 = arith.constant 0 : index
    %c0_102 = arith.constant 0 : index
    %50 = vector.load %arg10[%c0_99, %c1_100, %c0_101, %c0_102] : memref<1x10x10x8xf32, #tpu.memory_space<vmem>>, vector<1x8x8x8xf32>
    %c0_103 = arith.constant 0 : index
    %c1_104 = arith.constant 1 : index
    %c1_105 = arith.constant 1 : index
    %c0_106 = arith.constant 0 : index
    %51 = vector.load %arg10[%c0_103, %c1_104, %c1_105, %c0_106] : memref<1x10x10x8xf32, #tpu.memory_space<vmem>>, vector<1x8x8x8xf32>
    %c0_107 = arith.constant 0 : index
    %c1_108 = arith.constant 1 : index
    %c2_109 = arith.constant 2 : index
    %c0_110 = arith.constant 0 : index
    %52 = vector.load %arg10[%c0_107, %c1_108, %c2_109, %c0_110] : memref<1x10x10x8xf32, #tpu.memory_space<vmem>>, vector<1x8x8x8xf32>
    %c0_111 = arith.constant 0 : index
    %c2_112 = arith.constant 2 : index
    %c0_113 = arith.constant 0 : index
    %c0_114 = arith.constant 0 : index
    %53 = vector.load %arg10[%c0_111, %c2_112, %c0_113, %c0_114] : memref<1x10x10x8xf32, #tpu.memory_space<vmem>>, vector<1x8x8x8xf32>
    %c0_115 = arith.constant 0 : index
    %c2_116 = arith.constant 2 : index
    %c1_117 = arith.constant 1 : index
    %c0_118 = arith.constant 0 : index
    %54 = vector.load %arg10[%c0_115, %c2_116, %c1_117, %c0_118] : memref<1x10x10x8xf32, #tpu.memory_space<vmem>>, vector<1x8x8x8xf32>
    %c0_119 = arith.constant 0 : index
    %c2_120 = arith.constant 2 : index
    %c2_121 = arith.constant 2 : index
    %c0_122 = arith.constant 0 : index
    %55 = vector.load %arg10[%c0_119, %c2_120, %c2_121, %c0_122] : memref<1x10x10x8xf32, #tpu.memory_space<vmem>>, vector<1x8x8x8xf32>
    %56 = tpu.concatenate %47, %48, %49, %50, %51, %52, %53, %54, %55 in 3 : vector<1x8x8x8xf32>, vector<1x8x8x8xf32>, vector<1x8x8x8xf32>, vector<1x8x8x8xf32>, vector<1x8x8x8xf32>, vector<1x8x8x8xf32>, vector<1x8x8x8xf32>, vector<1x8x8x8xf32>, vector<1x8x8x8xf32> -> vector<1x8x8x72xf32>
    %57 = vector.shape_cast %56 : vector<1x8x8x72xf32> to vector<64x72xf32>
    %58 = arith.truncf %57 : vector<64x72xf32> to vector<64x72xbf16>
    %c0_123 = arith.constant 0 : index
    %c0_124 = arith.constant 0 : index
    %59 = vector.load %arg5[%c0_123, %c0_124] : memref<72x8xbf16, #tpu.memory_space<vmem>>, vector<72x8xbf16>
    %cst_125 = arith.constant dense<0.000000e+00> : vector<64x8xf32>
    %60 = tpu.matmul %58, %59, %cst_125 {dimension_numbers = #tpu.dot_dimension_numbers<[1], [0], [0], [1], [0, 0, 1, 1], [], []>} : vector<64x72xbf16>, vector<72x8xbf16>, vector<64x8xf32> -> vector<64x8xf32>
    %c0_126 = arith.constant 0 : index
    %c0_127 = arith.constant 0 : index
    %61 = vector.load %arg6[%c0_126, %c0_127] : memref<1x8xf32, #tpu.memory_space<vmem>>, vector<1x8xf32>
    %62 = vector.broadcast %61 : vector<1x8xf32> to vector<64x8xf32>
    %63 = arith.addf %60, %62 : vector<64x8xf32>
    %cst_128 = arith.constant 0.000000e+00 : f32
    %64 = vector.broadcast %cst_128 : f32 to vector<64x8xf32>
    %65 = arith.cmpf ogt, %63, %64 : vector<64x8xf32>
    %c0_129 = arith.constant 0 : index
    %66 = memref.load %arg7[%c0_129] : memref<1xf32, #tpu.memory_space<smem>>
    %67 = vector.broadcast %66 : f32 to vector<64x8xf32>
    %68 = arith.mulf %67, %63 : vector<64x8xf32>
    %69 = arith.select %65, %63, %68 : vector<64x8xi1>, vector<64x8xf32>
    %c0_130 = arith.constant 0 : index
    %c0_131 = arith.constant 0 : index
    %70 = vector.load %arg8[%c0_130, %c0_131] : memref<64x8xf32, #tpu.memory_space<vmem>>, vector<64x8xf32>
    tpu.vector_store %arg8[%c0_130, %c0_131], %69 {strides = array<i32>} : memref<64x8xf32, #tpu.memory_space<vmem>>, vector<64x8xf32>,
    return
  }
  func.func @transform_0(%arg0: i32) -> (i32, i32, i32, i32, i32) {
    %c0_i32 = arith.constant 0 : i32
    %c0_i32_0 = arith.constant 0 : i32
    %c0_i32_1 = arith.constant 0 : i32
    %c0_i32_2 = arith.constant 0 : i32
    %c0_i32_3 = arith.constant 0 : i32
    return %arg0, %c0_i32, %c0_i32_0, %c0_i32_1, %c0_i32_2 : i32, i32, i32, i32, i32
  }
  func.func @transform_1(%arg0: i32) -> (i32, i32) {
    %c0_i32 = arith.constant 0 : i32
    %c0_i32_0 = arith.constant 0 : i32
    %c0_i32_1 = arith.constant 0 : i32
    return %c0_i32, %c0_i32_0 : i32, i32
  }
  func.func @transform_2(%arg0: i32) -> (i32, i32) {
    %c0_i32 = arith.constant 0 : i32
    %c0_i32_0 = arith.constant 0 : i32
    %c0_i32_1 = arith.constant 0 : i32
    return %c0_i32, %c0_i32_0 : i32, i32
  }
  func.func @transform_3(%arg0: i32) -> i32 {
    %c0_i32 = arith.constant 0 : i32
    %c0_i32_0 = arith.constant 0 : i32
    return %c0_i32 : i32
  }
  func.func @transform_4(%arg0: i32) -> (i32, i32) {
    %c0_i32 = arith.constant 0 : i32
    %c0_i32_0 = arith.constant 0 : i32
    %c0_i32_1 = arith.constant 0 : i32
    return %c0_i32, %c0_i32_0 : i32, i32
  }
  func.func @transform_5(%arg0: i32) -> (i32, i32) {
    %c0_i32 = arith.constant 0 : i32
    %c0_i32_0 = arith.constant 0 : i32
    %c0_i32_1 = arith.constant 0 : i32
    return %c0_i32, %c0_i32_0 : i32, i32
  }
  func.func @transform_6(%arg0: i32) -> i32 {
    %c0_i32 = arith.constant 0 : i32
    %c0_i32_0 = arith.constant 0 : i32
    return %c0_i32 : i32
  }
  func.func @transform_7(%arg0: i32) -> (i32, i32) {
    %c0_i32 = arith.constant 0 : i32
    %c0_i32_0 = arith.constant 0 : i32
    return %arg0, %c0_i32 : i32, i32
  }
}

</mosaic_0001>

<bundles_post_ra>
// kernel: down_pallas.1
= control target key start
LH: loop header
LB: loop body
LE: loop exit
PB: predicated region body
PF: predicated region fallthrough
CT: control target
= control target key end

     0   :  { %s1967_s28 = smov 0   ;;  %s2468_s0 = inlined_call_operand.vmem [shape: f32[2,8,2,8,8], index: 0, kind: input, shape index: {}]   ;;  %s2469_s1 = inlined_call_operand.vmem [shape: bf16[36,8], index: 1, kind: input, shape index: {}]   ;;  %s2470_s2 = inlined_call_operand.vmem [shape: f32[1,8], index: 2, kind: input, shape index: {}]   ;;  %s2471_s3 = inlined_call_operand.<no memory space> [shape: f32[1], index: 3, kind: input, shape index: {}]   ;;  %s2472_s4 = inlined_call_operand.vmem [shape: bf16[72,8], index: 4, kind: input, shape index: {}]   ;;  %s2473_s5 = inlined_call_operand.vmem [shape: f32[1,8], index: 5, kind: input, shape index: {}]   ;;  %s2474_s6 = inlined_call_operand.<no memory space> [shape: f32[1], index: 6, kind: input, shape index: {}]   ;;  %s2475_s7 = inlined_call_operand.vmem [shape: f32[128,8], index: 7, kind: output, shape index: {}]  }
   0x1   :  { %12 = sst [smem:[#allocation4]] %s2471_s3 }
   0x2   :  { %13 = sst [smem:[#allocation5]] %s2474_s6 }
   0x3 LB: > { %s1973_s29 = sadd.s32 4294967295, %s1905_s28   ;;  %p1501_p0 = scmp.ge.s32.totalorder %s1905_s28, 1  ;;  %s1905_s28 = sphi %s1967_s28, %s19_s28  }
   0x4   : > { %p239_p1 = scmp.lt.s32.totalorder %s1905_s28, 3 }
   0x6   : > { %p240_p2 = pnand %p1501_p0, %p239_p1 }
   0x7   : > { %p271_p3 = scmp.lt.s32.totalorder (!%p240_p2), %s1973_s29, 1  ;;  %s1907_s10 = smov (!%p240_p2), 124  }
   0x8   : > { %243 = sbr.rel (%p240_p2) target bundleno = 841 (0x349), region = 48  ;;  %s1909_s11 = smov (!%p240_p2), 12  }
   0x9   : > { %s1910_s12 = smov (!%p240_p2), 4   ;;  %s1911_s13 = smov (!%p240_p2), 8  }
   0xa   : > { %s1912_s14 = smov (!%p240_p2), 24   ;;  %s1913_s15 = smov (!%p240_p2), 16  }
   0xb   : > { %s1914_s16 = smov (!%p240_p2), 20   ;;  %s1915_s17 = smov (!%p240_p2), 28  }
   0xc   : > { %s1916_s18 = smov (!%p240_p2), 32   ;;  %s866_s25 = sld [smem:[#allocation4]] (!%p240_p2) }
   0xd   : > { %s272_s3 = scalar_select %p271_p3, %s1973_s29, 1  ;;  %vm354_vm0 = vcmask 24576   ;;  %v1908_v24 = vmov 0.0   ;;  %vm347_vm1 = vcmask 31744   ;;  %vm349_vm2 = vcmask 25600  }
   0xe   : > { %358 = vst.msk [vmem:[#allocation2 + $0x30] sm:$0x1] %vm354_vm0, %v1908_v24  ;;  %vm721_vm3 = vcmask 64512   ;;  %vm825_vm4 = vcmask 1041408   ;;  %vm730_vm5 = vcmask 97280   ;;  %vm739_vm6 = vcmask 130048  }
   0xf   : > { %s1540_s6 = sshll.u32 %s272_s3, 7  ;;  %359 = vst.msk [vmem:[#allocation2 + $0x40] sm:$0x1] %vm354_vm0, %v1908_v24  ;;  %vm748_vm7 = vcmask 162816   ;;  %vm757_vm8 = vcmask 195584   ;;  %vm766_vm9 = vcmask 228352  }
  0x10   : > { %s275_s9 = scalar_lea.vmem %s2468_s0, %s1540_s6  ;;  %348 = vst.msk [vmem:[#allocation2] sm:$0xff] %vm347_vm1, %v1908_v24  ;;  %vm775_vm10 = vcmask 261120   ;;  %vm812_vm11 = vcmask 293888   ;;  %vm890_vm12 = vcmask 57344   ;;  %s1917_s3 = smov 40  }
  0x11   : > { %v285_v0 = vld [vmem:[%s275_s9 + $0x10] sm:$0xff]  ;;  %v286_v1 = vld [vmem:[%s275_s9 + $0x18] sm:$0xff]  ;;  %v287_v6 = vld [vmem:[%s275_s9 + $0x20] sm:$0xff]  ;;  %352 = vst.msk [vmem:[#allocation2 + $0x90] sm:$0xff] %vm347_vm1, %v1908_v24  ;;  %s1918_s6 = smov 56   ;;  %s1919_s30 = smov 48  }
  0x12   : > { %v289_v2 = vld [vmem:[%s275_s9 + $0x30] sm:$0xff]  ;;  %v1982_v3 = vmax.f32 %v285_v0, %v286_v1  ;;  %v290_v4 = vld [vmem:[%s275_s9 + $0x38] sm:$0xff]  ;;  %v288_v7 = vld [vmem:[%s275_s9 + $0x28] sm:$0xff]  ;;  %356 = vst.msk [vmem:[#allocation2 + $0x10] sm:$0x1] %vm354_vm0, %v1908_v24  ;;  %s1920_s8 = smov 64  }
  0x13   : > { %v1984_v5 = vmax.f32 %v289_v2, %v290_v4  ;;  %v293_v8 = vld [vmem:[%s275_s9 + $0x50] sm:$0xff]  ;;  %v294_v9 = vld [vmem:[%s275_s9 + $0x58] sm:$0xff]  ;;  %v291_v10 = vld [vmem:[%s275_s9 + $0x40] sm:$0xff]  ;;  %v301_v13 = vmax.f32 %v287_v6, %v288_v7  ;;  %357 = vst.msk [vmem:[#allocation2 + $0x20] sm:$0x1] %vm354_vm0, %v1908_v24  ;;  %s1504_s19 = sshll.u32 %s1973_s29, 3 }
  0x14   : > { %317 = vrot.lane.b32.xlu0 %v1982_v3, %s1907_s10  ;;  %v292_v11 = vld [vmem:[%s275_s9 + $0x48] sm:$0xff]  ;;  %v304_v12 = vmax.f32 %v293_v8, %v294_v9  ;;  %v295_v15 = vld [vmem:[%s275_s9 + $0x60] sm:$0xff]  ;;  %v297_v20 = vld [vmem:[%s275_s9 + $0x70] sm:$0xff]  ;;  %360 = vst.msk [vmem:[#allocation2 + $0x50] sm:$0x1] %vm354_vm0, %v1908_v24  ;;  %p277_p4 = scmp.lt.s32.totalorder %s1504_s19, 15 }
  0x15   : > { %321 = vrot.lane.b32.xlu1 %v1984_v5, %s1907_s10  ;;  %v303_v14 = vmax.f32 %v291_v10, %v292_v11  ;;  %v296_v16 = vld [vmem:[%s275_s9 + $0x68] sm:$0xff]  ;;  %v283_v18 = vld [vmem:[%s275_s9] sm:$0xff]  ;;  %v298_v21 = vld [vmem:[%s275_s9 + $0x78] sm:$0xff]  ;;  %361 = vst.msk [vmem:[#allocation2 + $0x60] sm:$0x1] %vm354_vm0, %v1908_v24  ;;  %s1415_s20 = sld [smem:[#allocation5]] }
  0x16   : > { %325 = vrot.lane.b32.xlu2 %v304_v12, %s1907_s10  ;;  %v305_v17 = vmax.f32 %v295_v15, %v296_v16  ;;  %v284_v19 = vld [vmem:[%s275_s9 + $0x8] sm:$0xff]  ;;  %v306_v23 = vmax.f32 %v297_v20, %v298_v21  ;;  %362 = vst.msk [vmem:[#allocation2 + $0x70] sm:$0x1] %vm354_vm0, %v1908_v24  ;;  %s2477_s19 = smov (!%p277_p4, %s1504_s19), 15 }
  0x17   : > { %v299_v22 = vmax.f32 %v283_v18, %v284_v19  ;;  %363 = vst.msk [vmem:[#allocation2 + $0x80] sm:$0x1] %vm354_vm0, %v1908_v24  ;;  %s1505_s23 = sshll.u32 %s2477_s19, 3 }
  0x18   : > { %366 = vst.msk [vmem:[#allocation2 + $0x19] sm:$0x1] %vm354_vm0, %v1908_v24  ;;  %s2447_s26 = scalar_lea.vmem %s2475_s7, %s1505_s23 }
  0x19   : > { %367 = vst.msk [vmem:[#allocation2 + $0x29] sm:$0x1] %vm354_vm0, %v1908_v24 }
  0x1a   : > { %368 = vst.msk [vmem:[#allocation2 + $0x39] sm:$0x1] %vm354_vm0, %v1908_v24 }
  0x1b   : > { %369 = vst.msk [vmem:[#allocation2 + $0x49] sm:$0x1] %vm354_vm0, %v1908_v24 }
  0x1c   : > { %319 = vrot.lane.b32.xlu0 %v301_v13, %s1907_s10  ;;  %370 = vst.msk [vmem:[#allocation2 + $0x59] sm:$0x1] %vm354_vm0, %v1908_v24 }
  0x1d   : > { %323 = vrot.lane.b32.xlu1 %v303_v14, %s1907_s10  ;;  %371 = vst.msk [vmem:[#allocation2 + $0x69] sm:$0x1] %vm354_vm0, %v1908_v24 }
  0x1e   : > { %327 = vrot.lane.b32.xlu2 %v305_v17, %s1907_s10  ;;  %372 = vst.msk [vmem:[#allocation2 + $0x79] sm:$0x1] %vm354_vm0, %v1908_v24 }
  0x1f   : > { %373 = vst.msk [vmem:[#allocation2 + $0x89] sm:$0x1] %vm354_vm0, %v1908_v24 }
  0x20   : > { %355 = vst.msk [vmem:[#allocation2] sm:$0x1] %vm354_vm0, %v1908_v24 }
  0x21   : > { %364 = vst.msk [vmem:[#allocation2 + $0x90] sm:$0x1] %vm354_vm0, %v1908_v24 }
  0x22   : > { %350 = vst.msk [vmem:[#allocation2 + $0x8] sm:$0x3] %vm349_vm2, %v1908_v24 }
  0x23   : > { %353 = vst.msk [vmem:[#allocation2 + $0x98] sm:$0x3] %vm349_vm2, %v1908_v24 }
  0x24   : > { %315 = vrot.lane.b32.xlu0 %v299_v22, %s1907_s10  ;;  %365 = vst.msk [vmem:[#allocation2 + $0x9] sm:$0x1] %vm354_vm0, %v1908_v24 }
  0x25   : > { %329 = vrot.lane.b32.xlu1 %v306_v23, %s1907_s10  ;;  %374 = vst.msk [vmem:[#allocation2 + $0x99] sm:$0x1] %vm354_vm0, %v1908_v24 }
  0x26   : > { %884 = vst.msk [vmem:[#allocation3] sm:$0xff] %vm721_vm3, %v1908_v24 }
  0x27   : > { %888 = vst.msk [vmem:[#allocation3 + $0x90] sm:$0xff] %vm721_vm3, %v1908_v24 }
  0x28   : > { %902 = vst.msk [vmem:[#allocation3 + $0x19] sm:$0x1] %vm890_vm12, %v1908_v24 }
  0x29   : > { %v392_v6 = vld [vmem:[#allocation2 + $0x1] sm:$0xff]  ;;  %891 = vst.msk [vmem:[#allocation3] sm:$0x1] %vm890_vm12, %v1908_v24 }
  0x2a   : > { %892 = vst.msk [vmem:[#allocation3 + $0x10] sm:$0x1] %vm890_vm12, %v1908_v24 }
  0x2b   : > { %v400_v11 = vld [vmem:[#allocation2 + $0x2] sm:$0xff]  ;;  %893 = vst.msk [vmem:[#allocation3 + $0x20] sm:$0x1] %vm890_vm12, %v1908_v24 }
  0x2c   : > { %894 = vst.msk [vmem:[#allocation3 + $0x30] sm:$0x1] %vm890_vm12, %v1908_v24 }
  0x2d   : > { %895 = vst.msk [vmem:[#allocation3 + $0x40] sm:$0x1] %vm890_vm12, %v1908_v24 }
  0x2e   : > { %896 = vst.msk [vmem:[#allocation3 + $0x50] sm:$0x1] %vm890_vm12, %v1908_v24 }
  0x2f   : > { %897 = vst.msk [vmem:[#allocation3 + $0x60] sm:$0x1] %vm890_vm12, %v1908_v24 }
  0x30   : > { %898 = vst.msk [vmem:[#allocation3 + $0x70] sm:$0x1] %vm890_vm12, %v1908_v24 }
  0x31   : > { %899 = vst.msk [vmem:[#allocation3 + $0x80] sm:$0x1] %vm890_vm12, %v1908_v24 }
  0x32   : > { %900 = vst.msk [vmem:[#allocation3 + $0x90] sm:$0x1] %vm890_vm12, %v1908_v24 }
  0x33   : > { %903 = vst.msk [vmem:[#allocation3 + $0x29] sm:$0x1] %vm890_vm12, %v1908_v24 }
  0x34   : > { %904 = vst.msk [vmem:[#allocation3 + $0x39] sm:$0x1] %vm890_vm12, %v1908_v24 }
  0x35   : > { %905 = vst.msk [vmem:[#allocation3 + $0x49] sm:$0x1] %vm890_vm12, %v1908_v24 }
  0x36   : > { %906 = vst.msk [vmem:[#allocation3 + $0x59] sm:$0x1] %vm890_vm12, %v1908_v24 }
  0x37   : > { %907 = vst.msk [vmem:[#allocation3 + $0x69] sm:$0x1] %vm890_vm12, %v1908_v24 }
  0x38   : > { %908 = vst.msk [vmem:[#allocation3 + $0x79] sm:$0x1] %vm890_vm12, %v1908_v24 }
  0x39   : > { %909 = vst.msk [vmem:[#allocation3 + $0x89] sm:$0x1] %vm890_vm12, %v1908_v24 }
  0x70   : > { %v326_v25 = vpop.permute.xlu2 %325 }
  0x71   : > { %v344_v26 = vmax.f32 %v304_v12, %v326_v25 }
  0x73   : > { %381 = vst.msk [vmem:[#allocation2 + $0x61] sm:$0xff] %vm347_vm1, %v344_v26 }
  0x78   : > { %v328_v27 = vpop.permute.xlu2 %327 }
  0x79   : > { %v345_v28 = vmax.f32 %v305_v17, %v328_v27 }
  0x7a   : > { %v421_v60 = vld [vmem:[#allocation2 + $0x61] sm:$0xff] }
  0x7b   : > { %382 = vst.msk [vmem:[#allocation2 + $0x71] sm:$0xff] %vm347_vm1, %v345_v28  ;;  %v2075_v61 = vld [vmem:[#allocation2 + $0x60] sm:$0xff]  ;;  %v448_v28 = vld [vmem:[#allocation2 + $0x91] sm:$0xff] }
  0x7c   : > { %v429_v1 = vld [vmem:[#allocation2 + $0x62] sm:$0xff] }
  0x82   : > { %v446_v0 = vld [vmem:[#allocation2 + $0x71] sm:$0xff] }
  0x83   : > { %v2082_v2 = vld [vmem:[#allocation2 + $0x70] sm:$0xff] }
  0x84   : > { %v454_v7 = vld [vmem:[#allocation2 + $0x72] sm:$0xff] }
  0x85   : > { %v1652_v10 = vpack.i.bf16 %v454_v7, %v429_v1 }
  0x86   : > { %v318_v29 = vpop.permute.xlu0 %317 }
  0x87   : > { %v340_v30 = vmax.f32 %v1982_v3, %v318_v29  ;;  %v322_v31 = vpop.permute.xlu1 %321  ;;  %v1647_v3 = vpack.i.bf16 %v446_v0, %v421_v60 }
  0x88   : > { %v342_v32 = vmax.f32 %v1984_v5, %v322_v31  ;;  %v1642_v5 = vpack.i.bf16 %v2082_v2, %v2075_v61  ;;  %v456_v31 = vld [vmem:[#allocation2 + $0x92] sm:$0xff] }
  0x89   : > { %377 = vst.msk [vmem:[#allocation2 + $0x21] sm:$0xff] %vm347_vm1, %v340_v30 }
  0x8a   : > { %379 = vst.msk [vmem:[#allocation2 + $0x41] sm:$0xff] %vm347_vm1, %v342_v32 }
  0x8e   : > { %v320_v33 = vpop.permute.xlu0 %319 }
  0x8f   : > { %v341_v34 = vmax.f32 %v301_v13, %v320_v33  ;;  %v324_v35 = vpop.permute.xlu1 %323 }
  0x90   : > { %v343_v36 = vmax.f32 %v303_v14, %v324_v35  ;;  %v2038_v40 = vld [vmem:[#allocation2 + $0x21] sm:$0xff] }
  0x91   : > { %378 = vst.msk [vmem:[#allocation2 + $0x31] sm:$0xff] %vm347_vm1, %v341_v34  ;;  %v2036_v38 = vld [vmem:[#allocation2 + $0x40] sm:$0xff]  ;;  %v792_v34 = vld [vmem:[%s2469_s1 + $0x10] sm:$0x3] }
  0x92   : > { %380 = vst.msk [vmem:[#allocation2 + $0x51] sm:$0xff] %vm347_vm1, %v343_v36  ;;  %v2040_v41 = vld [vmem:[#allocation2 + $0x22] sm:$0xff]  ;;  %v806_v35 = vunpack.c.l.b16 %v792_v34 }
  0x93   : > { %v419_v51 = vld [vmem:[#allocation2 + $0x41] sm:$0xff] }
  0x94   : > { %v427_v53 = vld [vmem:[#allocation2 + $0x42] sm:$0xff]  ;;  %v809_v36 = vpack.c.b16 %v806_v35, %v806_v35 }
  0x95   : > { %v409_v18 = vld [vmem:[#allocation2 + $0x20] sm:$0xff] }
  0x96   : > { %v316_v37 = vpop.permute.xlu0 %315 }
  0x97   : > { %v339_v39 = vmax.f32 %v299_v22, %v316_v37  ;;  %v330_v42 = vpop.permute.xlu1 %329  ;;  %v827_v37 = vsel %vm825_vm4, %v809_v36, 0 }
  0x98   : > { %v2042_v43 = vld [vmem:[#allocation2 + $0x30] sm:$0xff]  ;;  %v346_v46 = vmax.f32 %v306_v23, %v330_v42  ;;  %1547 = vmatpush.bf16.msra.mxu3 %v827_v37  ;;  %834 = vmatpush.bf16.msra.mxu0 %v827_v37 }
  0x99   : > { %v395_v44 = vld [vmem:[#allocation2 + $0x31] sm:$0xff]  ;;  %376 = vst.msk [vmem:[#allocation2 + $0x11] sm:$0xff] %vm347_vm1, %v339_v39  ;;  %v1587_v47 = vpack.i.bf16 %v2036_v38, %v2042_v43  ;;  %v1712_v29 = vpack.i.bf16 %v2042_v43, %v409_v18  ;;  %v1542_v39 = vld [vmem:[%s2469_s1 + $0x8] sm:$0xff] }
  0x9a   : > { %v403_v45 = vld [vmem:[#allocation2 + $0x32] sm:$0xff]  ;;  %v2048_v48 = vpack.i.bf16 %v395_v44, %v2038_v40  ;;  %383 = vst.msk [vmem:[#allocation2 + $0x81] sm:$0xff] %vm347_vm1, %v346_v46  ;;  %v1592_v54 = vpack.i.bf16 %v419_v51, %v395_v44 }
  0x9b   : > { %v2051_v49 = vpack.i.bf16 %v403_v45, %v2040_v41  ;;  %1588 = vrot.lane.b32.xlu1 %v1587_v47, %s1909_s11  ;;  %v2059_v50 = vld [vmem:[#allocation2 + $0x50] sm:$0xff]  ;;  %v1597_v55 = vpack.i.bf16 %v427_v53, %v403_v45 }
  0x9c   : > { %1578 = vrot.lane.b32.xlu2 %v2048_v48, %s1910_s12  ;;  %v1602_v52 = vpack.i.bf16 %v2059_v50, %v2036_v38  ;;  %v397_v56 = vld [vmem:[#allocation2 + $0x51] sm:$0xff]  ;;  %v1627_v63 = vpack.i.bf16 %v2075_v61, %v2059_v50  ;;  %1548 = vmatpush.bf16.msra.mxu3 %v1542_v39 }
  0x9d   : > { %1583 = vrot.lane.b32.xlu0 %v2051_v49, %s1911_s13  ;;  %v452_v57 = vld [vmem:[#allocation2 + $0x52] sm:$0xff]  ;;  %v1617_v58 = vpack.i.bf16 %v397_v56, %v419_v51  ;;  %v1632_v62 = vpack.i.bf16 %v421_v60, %v397_v56  ;;  %835 = vmatpush.bf16.msra.mxu0 %v1542_v39 }
  0x9e   : > { %v1612_v59 = vpack.i.bf16 %v452_v57, %v427_v53  ;;  %v1637_v4 = vpack.i.bf16 %v429_v1, %v452_v57  ;;  %v440_v23 = vld [vmem:[#allocation2 + $0x90] sm:$0xff] }
  0xa0   : > { %v393_v8 = vld [vmem:[#allocation2 + $0x11] sm:$0xff] }
  0xa1   : > { %v1662_v9 = vpack.i.bf16 %v393_v8, %v392_v6  ;;  %v415_v12 = vld [vmem:[#allocation2 + $0x80] sm:$0xff]  ;;  %v401_v13 = vld [vmem:[#allocation2 + $0x12] sm:$0xff]  ;;  %v1692_v20 = vpack.i.bf16 %v2038_v40, %v393_v8 }
  0xa2   : > { %v1672_v14 = vpack.i.bf16 %v401_v13, %v400_v11  ;;  %v1677_v15 = vpack.i.bf16 %v415_v12, %v2082_v2  ;;  %v2096_v16 = vld [vmem:[#allocation2 + $0x10] sm:$0xff]  ;;  %v423_v17 = vld [vmem:[#allocation2 + $0x81] sm:$0xff]  ;;  %v1707_v26 = vpack.i.bf16 %v440_v23, %v415_v12  ;;  %v1702_v27 = vpack.i.bf16 %v2040_v41, %v401_v13 }
  0xa3   : > { %1603 = vrot.lane.b32.xlu1 %v1602_v52, %s1912_s14  ;;  %v1682_v19 = vpack.i.bf16 %v409_v18, %v2096_v16  ;;  %v1687_v21 = vpack.i.bf16 %v423_v17, %v446_v0  ;;  %v431_v22 = vld [vmem:[#allocation2 + $0x82] sm:$0xff]  ;;  %v1717_v30 = vpack.i.bf16 %v448_v28, %v423_v17 }
  0xa4   : > { %1593 = vrot.lane.b32.xlu2 %v1592_v54, %s1913_s15  ;;  %v1697_v25 = vpack.i.bf16 %v431_v22, %v454_v7  ;;  %v1727_v32 = vpack.i.bf16 %v456_v31, %v431_v22  ;;  %v1541_v41 = vld [vmem:[%s2469_s1] sm:$0xff] }
  0xa5   : > { %1598 = vrot.lane.b32.xlu0 %v1597_v55, %s1914_s16  ;;  %1549 = vmatpush.bf16.msra.mxu3 %v1541_v41 }
  0xa6   : > { %836 = vmatpush.bf16.msra.mxu0 %v1541_v41 }
  0xab   : > { %1618 = vrot.lane.b32.xlu1 %v1617_v58, %s1910_s12 }
  0xac   : > { %1608 = vrot.lane.b32.xlu2 %v1617_v58, %s1915_s17 }
  0xad   : > { %1613 = vrot.lane.b32.xlu0 %v1612_v59, %s1916_s18 }
  0xb3   : > { %1633 = vrot.lane.b32.xlu1 %v1632_v62, %s1913_s15 }
  0xb4   : > { %1623 = vrot.lane.b32.xlu2 %v1612_v59, %s1911_s13 }
  0xb5   : > { %1628 = vrot.lane.b32.xlu0 %v1627_v63, %s1909_s11 }
  0xbb   : > { %1648 = vrot.lane.b32.xlu1 %v1647_v3, %s1915_s17 }
  0xbc   : > { %1638 = vrot.lane.b32.xlu2 %v1637_v4, %s1914_s16 }
  0xbd   : > { %1643 = vrot.lane.b32.xlu0 %v1642_v5, %s1912_s14 }
  0xc3   : > { %1663 = vrot.lane.b32.xlu1 %v1662_v9, %s1910_s12 }
  0xc4   : > { %1653 = vrot.lane.b32.xlu2 %v1652_v10, %s1916_s18 }
  0xc5   : > { %1658 = vrot.lane.b32.xlu0 %v1647_v3, %s1910_s12 }
  0xcb   : > { %1678 = vrot.lane.b32.xlu1 %v1677_v15, %s1909_s11 }
  0xcc   : > { %1668 = vrot.lane.b32.xlu2 %v1652_v10, %s1911_s13 }
  0xcd   : > { %1673 = vrot.lane.b32.xlu0 %v1672_v14, %s1911_s13 }
  0xd3   : > { %1693 = vrot.lane.b32.xlu1 %v1692_v20, %s1913_s15 }
  0xd4   : > { %1683 = vrot.lane.b32.xlu2 %v1682_v19, %s1909_s11 }
  0xd5   : > { %1688 = vrot.lane.b32.xlu0 %v1687_v21, %s1913_s15 }
  0xdb   : > { %1708 = vrot.lane.b32.xlu1 %v1707_v26, %s1912_s14 }
  0xdc   : > { %1698 = vrot.lane.b32.xlu2 %v1697_v25, %s1914_s16 }
  0xdd   : > { %1703 = vrot.lane.b32.xlu0 %v1702_v27, %s1914_s16 }
  0xe3   : > { %1723 = vrot.lane.b32.xlu1 %v2048_v48, %s1915_s17 }
  0xe4   : > { %1713 = vrot.lane.b32.xlu2 %v1712_v29, %s1912_s14 }
  0xe5   : > { %1718 = vrot.lane.b32.xlu0 %v1717_v30, %s1915_s17 }
  0xec   : > { %1728 = vrot.lane.b32.xlu2 %v1727_v32, %s1916_s18 }
  0xed   : > { %1733 = vrot.lane.b32.xlu0 %v2051_v49, %s1916_s18 }
  0xf6   : > { %v1579_v33 = vpop.permute.xlu2 %1578 }
  0xf7   : > { %v1581_v46 = vunpack.i.h.bf16 %v1579_v33  ;;  %v1580_v47 = vunpack.i.l.bf16 %v1579_v33 }
  0xf9   : > { %v715_v52 = vsel %vm347_vm1, %v409_v18, %v1580_v47  ;;  %v716_v53 = vsel %vm347_vm1, %v2042_v43, %v1581_v46 }
  0xfe   : > { %v1594_v40 = vpop.permute.xlu2 %1593 }
  0xff   : > { %v1596_v0 = vunpack.i.h.bf16 %v1594_v40  ;;  %v1595_v1 = vunpack.i.l.bf16 %v1594_v40 }
 0x106   : > { %v1609_v42 = vpop.permute.xlu2 %1608 }
 0x107   : > { %v1611_v13 = vunpack.i.h.bf16 %v1609_v42  ;;  %v1610_v14 = vunpack.i.l.bf16 %v1609_v42 }
 0x10d   : > { %v1589_v44 = vpop.permute.xlu1 %1588 }
 0x10e   : > { %v2128_v45 = vpop.permute.xlu2 %1623  ;;  %v1591_v54 = vunpack.i.h.bf16 %v1589_v44  ;;  %v1590_v55 = vunpack.i.l.bf16 %v1589_v44 }
 0x10f   : > { %v1584_v48 = vpop.permute.xlu0 %1583  ;;  %v1626_v32 = vunpack.i.h.bf16 %v2128_v45  ;;  %v1625_v33 = vunpack.i.l.bf16 %v2128_v45 }
 0x110   : > { %v1586_v49 = vunpack.i.h.bf16 %v1584_v48  ;;  %v1585_v51 = vunpack.i.l.bf16 %v1584_v48 }
 0x112   : > { %v725_v56 = vsel %vm721_vm3, %v716_v53, %v1586_v49  ;;  %v724_v57 = vsel %vm721_vm3, %v715_v52, %v1585_v51 }
 0x113   : > { %v734_v59 = vsel %vm730_vm5, %v725_v56, %v1591_v54  ;;  %v733_v60 = vsel %vm730_vm5, %v724_v57, %v1590_v55 }
 0x114   : > { %v742_v6 = vsel %vm739_vm6, %v733_v60, %v1595_v1  ;;  %v743_v7 = vsel %vm739_vm6, %v734_v59, %v1596_v0 }
 0x115   : > { %v1604_v58 = vpop.permute.xlu1 %1603 }
 0x116   : > { %v2137_v62 = vpop.permute.xlu2 %1638  ;;  %v1606_v4 = vunpack.i.h.bf16 %v1604_v58  ;;  %v1605_v5 = vunpack.i.l.bf16 %v1604_v58 }
 0x117   : > { %v1599_v63 = vpop.permute.xlu0 %1598  ;;  %v1641_v45 = vunpack.i.h.bf16 %v2137_v62  ;;  %v1640_v47 = vunpack.i.l.bf16 %v2137_v62 }
 0x118   : > { %v1601_v43 = vunpack.i.h.bf16 %v1599_v63  ;;  %v1600_v3 = vunpack.i.l.bf16 %v1599_v63 }
 0x11a   : > { %v751_v8 = vsel %vm748_vm7, %v742_v6, %v1600_v3  ;;  %v752_v9 = vsel %vm748_vm7, %v743_v7, %v1601_v43 }
 0x11b   : > { %v760_v10 = vsel %vm757_vm8, %v751_v8, %v1605_v5  ;;  %v761_v11 = vsel %vm757_vm8, %v752_v9, %v1606_v4  ;;  %v384_v9 = vld [vmem:[#allocation2] sm:$0xff] }
 0x11c   : > { %v769_v20 = vsel %vm766_vm9, %v760_v10, %v1610_v14  ;;  %v770_v21 = vsel %vm766_vm9, %v761_v11, %v1611_v13 }
 0x11d   : > { %v1619_v12 = vpop.permute.xlu1 %1618 }
 0x11e   : > { %v1654_v19 = vpop.permute.xlu2 %1653  ;;  %v1621_v25 = vunpack.i.h.bf16 %v1619_v12  ;;  %v1620_v26 = vunpack.i.l.bf16 %v1619_v12 }
 0x11f   : > { %v1614_v15 = vpop.permute.xlu0 %1613  ;;  %v1656_v56 = vunpack.i.h.bf16 %v1654_v19  ;;  %v1655_v57 = vunpack.i.l.bf16 %v1654_v19 }
 0x120   : > { %v1616_v17 = vunpack.i.h.bf16 %v1614_v15  ;;  %v1615_v18 = vunpack.i.l.bf16 %v1614_v15  ;;  %v718_v29 = vsel %vm347_vm1, %v2059_v50, %v1621_v25  ;;  %v717_v30 = vsel %vm347_vm1, %v2036_v38, %v1620_v26 }
 0x121   : > { %v726_v39 = vsel %vm721_vm3, %v717_v30, %v1625_v33  ;;  %v727_v40 = vsel %vm721_vm3, %v718_v29, %v1626_v32 }
 0x122   : > { %v778_v22 = vsel %vm775_vm10, %v769_v20, %v1615_v18  ;;  %v779_v23 = vsel %vm775_vm10, %v770_v21, %v1616_v17 }
 0x123   : > { %v785_v27 = vpack.c.bf16 %v779_v23, %v778_v22 }
 0x125   : > { %1515 = vmatmul.msk.bf16.vlgmr.msra.gmra.mxu3 %vm812_vm11, %v785_v27  ;;  %v1634_v28 = vpop.permute.xlu1 %1633 }
 0x126   : > { %v1636_v36 = vunpack.i.h.bf16 %v1634_v28  ;;  %v1635_v37 = vunpack.i.l.bf16 %v1634_v28  ;;  %v2158_v41 = vpop.permute.xlu2 %1668 }
 0x127   : > { %v1629_v31 = vpop.permute.xlu0 %1628  ;;  %v1671_v28 = vunpack.i.h.bf16 %v2158_v41  ;;  %v1670_v29 = vunpack.i.l.bf16 %v2158_v41 }
 0x128   : > { %v1631_v34 = vunpack.i.h.bf16 %v1629_v31  ;;  %v1630_v35 = vunpack.i.l.bf16 %v1629_v31 }
 0x12a   : > { %v736_v50 = vsel %vm730_vm5, %v727_v40, %v1631_v34  ;;  %v735_v42 = vsel %vm730_vm5, %v726_v39, %v1630_v35 }
 0x12b   : > { %v745_v38 = vsel %vm739_vm6, %v736_v50, %v1636_v36  ;;  %v744_v44 = vsel %vm739_vm6, %v735_v42, %v1635_v37 }
 0x12c   : > { %v753_v54 = vsel %vm748_vm7, %v744_v44, %v1640_v47  ;;  %v754_v55 = vsel %vm748_vm7, %v745_v38, %v1641_v45 }
 0x12d   : > { %v1649_v46 = vpop.permute.xlu1 %1648 }
 0x12e   : > { %v1651_v48 = vunpack.i.h.bf16 %v1649_v46  ;;  %v1650_v49 = vunpack.i.l.bf16 %v1649_v46  ;;  %v1684_v1 = vpop.permute.xlu2 %1683 }
 0x12f   : > { %v1644_v51 = vpop.permute.xlu0 %1643  ;;  %v1686_v23 = vunpack.i.h.bf16 %v1684_v1  ;;  %v1685_v25 = vunpack.i.l.bf16 %v1684_v1 }
 0x130   : > { %v1646_v52 = vunpack.i.h.bf16 %v1644_v51  ;;  %v1645_v53 = vunpack.i.l.bf16 %v1644_v51 }
 0x132   : > { %v762_v58 = vsel %vm757_vm8, %v753_v54, %v1645_v53  ;;  %v763_v59 = vsel %vm757_vm8, %v754_v55, %v1646_v52 }
 0x133   : > { %v771_v60 = vsel %vm766_vm9, %v762_v58, %v1650_v49  ;;  %v772_v63 = vsel %vm766_vm9, %v763_v59, %v1651_v48 }
 0x134   : > { %v780_v62 = vsel %vm775_vm10, %v771_v60, %v1655_v57  ;;  %v781_v0 = vsel %vm775_vm10, %v772_v63, %v1656_v56 }
 0x135   : > { %v786_v43 = vpack.c.bf16 %v781_v0, %v780_v62  ;;  %v1664_v3 = vpop.permute.xlu1 %1663 }
 0x136   : > { %v1699_v6 = vpop.permute.xlu2 %1698  ;;  %v1665_v8 = vunpack.i.l.bf16 %v1664_v3  ;;  %v1666_v11 = vunpack.i.h.bf16 %v1664_v3 }
 0x137   : > { %v1659_v4 = vpop.permute.xlu0 %1658  ;;  %1516 = vmatmul.msk.bf16.gmra.mxu3 %vm812_vm11, %v786_v43  ;;  %v1701_v51 = vunpack.i.h.bf16 %v1699_v6  ;;  %v1700_v52 = vunpack.i.l.bf16 %v1699_v6 }
 0x138   : > { %v713_v15 = vsel %vm347_vm1, %v384_v9, %v1665_v8  ;;  %v1661_v18 = vunpack.i.h.bf16 %v1659_v4  ;;  %v1660_v19 = vunpack.i.l.bf16 %v1659_v4  ;;  %v714_v20 = vsel %vm347_vm1, %v2096_v16, %v1666_v11 }
 0x13a   : > { %v720_v30 = vsel %vm347_vm1, %v2082_v2, %v1661_v18  ;;  %v719_v31 = vsel %vm347_vm1, %v2075_v61, %v1660_v19  ;;  %vm885_vm1 = vcmask 58368  }
 0x13b   : > { %v728_v2 = vsel %vm721_vm3, %v719_v31, %v1670_v29  ;;  %v729_v61 = vsel %vm721_vm3, %v720_v30, %v1671_v28  ;;  %886 = vst.msk [vmem:[#allocation3 + $0x8] sm:$0x3] %vm885_vm1, %v1908_v24 }
 0x13c   : > { %901 = vst.msk [vmem:[#allocation3 + $0x9] sm:$0x1] %vm890_vm12, %v1908_v24 }
 0x13d   : > { %v1679_v5 = vpop.permute.xlu1 %1678  ;;  %889 = vst.msk [vmem:[#allocation3 + $0x98] sm:$0x3] %vm885_vm1, %v1908_v24 }
 0x13e   : > { %v1714_v17 = vpop.permute.xlu2 %1713  ;;  %v1681_v16 = vunpack.i.h.bf16 %v1679_v5  ;;  %v1680_v33 = vunpack.i.l.bf16 %v1679_v5  ;;  %910 = vst.msk [vmem:[#allocation3 + $0x99] sm:$0x1] %vm890_vm12, %v1908_v24  ;;  %vm1290_vm12 = vcmask 392192  }
 0x13f   : > { %v1674_v7 = vpop.permute.xlu0 %1673  ;;  %v1716_v55 = vunpack.i.h.bf16 %v1714_v17  ;;  %v1715_v56 = vunpack.i.l.bf16 %v1714_v17 }
 0x140   : > { %v1676_v13 = vunpack.i.h.bf16 %v1674_v7  ;;  %v1675_v14 = vunpack.i.l.bf16 %v1674_v7  ;;  %v737_v46 = vsel %vm730_vm5, %v728_v2, %v1680_v33  ;;  %v738_v45 = vsel %vm730_vm5, %v729_v61, %v1681_v16 }
 0x142   : > { %v723_v21 = vsel %vm721_vm3, %v714_v20, %v1676_v13  ;;  %v722_v22 = vsel %vm721_vm3, %v713_v15, %v1675_v14 }
 0x143   : > { %v731_v34 = vsel %vm730_vm5, %v722_v22, %v1685_v25  ;;  %v732_v35 = vsel %vm730_vm5, %v723_v21, %v1686_v23  ;;  %v1897_v22 = vld [vmem:[%s2470_s2] ss:$0 sm:$0xff]  ;;  %v867_v25 = vstv %s866_s25 }
 0x145   : > { %v1694_v10 = vpop.permute.xlu1 %1693 }
 0x146   : > { %v1696_v26 = vunpack.i.h.bf16 %v1694_v10  ;;  %v1695_v27 = vunpack.i.l.bf16 %v1694_v10  ;;  %v1729_v47 = vpop.permute.xlu2 %1728 }
 0x147   : > { %v1689_v12 = vpop.permute.xlu0 %1688  ;;  %v1731_v57 = vunpack.i.h.bf16 %v1729_v47  ;;  %v1730_v58 = vunpack.i.l.bf16 %v1729_v47 }
 0x148   : > { %v1691_v37 = vunpack.i.h.bf16 %v1689_v12  ;;  %v1690_v39 = vunpack.i.l.bf16 %v1689_v12  ;;  %v740_v41 = vsel %vm739_vm6, %v731_v34, %v1695_v27  ;;  %v741_v42 = vsel %vm739_vm6, %v732_v35, %v1696_v26 }
 0x14a   : > { %v746_v48 = vsel %vm739_vm6, %v737_v46, %v1690_v39  ;;  %v747_v49 = vsel %vm739_vm6, %v738_v45, %v1691_v37 }
 0x14b   : > { %v755_v60 = vsel %vm748_vm7, %v746_v48, %v1700_v52  ;;  %v756_v63 = vsel %vm748_vm7, %v747_v49, %v1701_v51  ;;  %v936_v52 = vld [vmem:[#allocation3 + $0x2] sm:$0xff] }
 0x14d   : > { %v1709_v32 = vpop.permute.xlu1 %1708 }
 0x14e   : > { %v1711_v53 = vunpack.i.h.bf16 %v1709_v32  ;;  %v1710_v54 = vunpack.i.l.bf16 %v1709_v32 }
 0x14f   : > { %v1704_v36 = vpop.permute.xlu0 %1703 }
 0x150   : > { %v1706_v40 = vunpack.i.h.bf16 %v1704_v36  ;;  %v1705_v50 = vunpack.i.l.bf16 %v1704_v36  ;;  %v764_v6 = vsel %vm757_vm8, %v755_v60, %v1710_v54  ;;  %v765_v7 = vsel %vm757_vm8, %v756_v63, %v1711_v53  ;;  %v928_v53 = vld [vmem:[#allocation3 + $0x1] sm:$0xff] }
 0x152   : > { %v749_v38 = vsel %vm748_vm7, %v740_v41, %v1705_v50  ;;  %v750_v44 = vsel %vm748_vm7, %v741_v42, %v1706_v40 }
 0x153   : > { %v758_v43 = vsel %vm757_vm8, %v749_v38, %v1715_v56  ;;  %v759_v3 = vsel %vm757_vm8, %v750_v44, %v1716_v55 }
 0x155   : > { %v1724_v59 = vpop.permute.xlu1 %1723 }
 0x156   : > { %v1726_v62 = vunpack.i.h.bf16 %v1724_v59  ;;  %v1725_v0 = vunpack.i.l.bf16 %v1724_v59 }
 0x157   : > { %v1719_v1 = vpop.permute.xlu0 %1718 }
 0x158   : > { %v1721_v4 = vunpack.i.h.bf16 %v1719_v1  ;;  %v1720_v5 = vunpack.i.l.bf16 %v1719_v1  ;;  %v767_v8 = vsel %vm766_vm9, %v758_v43, %v1725_v0  ;;  %v768_v9 = vsel %vm766_vm9, %v759_v3, %v1726_v62 }
 0x15a   : > { %v773_v10 = vsel %vm766_vm9, %v764_v6, %v1720_v5  ;;  %v774_v11 = vsel %vm766_vm9, %v765_v7, %v1721_v4  ;;  %vm1374_vm9 = vcmask 1043456  }
 0x15b   : > { %v782_v12 = vsel %vm775_vm10, %v773_v10, %v1730_v58  ;;  %v783_v13 = vsel %vm775_vm10, %v774_v11, %v1731_v57 }
 0x15c   : > { %v787_v14 = vpack.c.bf16 %v783_v13, %v782_v12 }
 0x15e   : > { %1517 = vmatmul.msk.bf16.gmra.mxu3 %vm812_vm11, %v787_v14 }
 0x15f   : > { %v1734_v15 = vpop.permute.xlu0 %1733 }
 0x160   : > { %v1736_v17 = vunpack.i.h.bf16 %v1734_v15  ;;  %v1735_v18 = vunpack.i.l.bf16 %v1734_v15 }
 0x162   : > { %v776_v19 = vsel %vm775_vm10, %v767_v8, %v1735_v18  ;;  %v777_v20 = vsel %vm775_vm10, %v768_v9, %v1736_v17 }
 0x163   : > { %v784_v21 = vpack.c.bf16 %v777_v20, %v776_v19 }
 0x165   : > { %1514 = vmatmul.msk.bf16.vlgmr.msra.gmra.mxu0 %vm812_vm11, %v784_v21  ;;  %vm1281_vm11 = vcmask 326656  }
 0x1a8   : > { %v843_v23 = vpop.f32.mrf.mxu3 }
 0x1a9   : > { %v844_v26 = vadd.f32 %v1897_v22, %v843_v23 }
 0x1ab   : > { %vm860_vm13 = vcmp.gt.f32.partialorder %v844_v26, 0.0  ;;  %v870_v27 = vmul.f32 %v867_v25, %v844_v26 }
 0x1ad   : > { %v878_v28 = vsel %vm860_vm13, %v844_v26, %v870_v27  ;;  %vm1299_vm13 = vcmask 457728  }
 0x1ae   : > { %914 = vst.msk [vmem:[#allocation3 + $0x31] sm:$0xff] %vm721_vm3, %v878_v28 }
 0x1b0   : > { %v845_v29 = vpop.f32.mrf.mxu3 }
 0x1b1   : > { %v846_v30 = vadd.f32 %v1897_v22, %v845_v29 }
 0x1b3   : > { %vm861_vm14 = vcmp.gt.f32.partialorder %v846_v30, 0.0  ;;  %v871_v31 = vmul.f32 %v867_v25, %v846_v30 }
 0x1b5   : > { %v879_v32 = vsel %vm861_vm14, %v846_v30, %v871_v31  ;;  %v978_v4 = vld [vmem:[#allocation3 + $0x31] sm:$0xff]  ;;  %vm1308_vm14 = vcmask 523264  }
 0x1b6   : > { %915 = vst.msk [vmem:[#allocation3 + $0x41] sm:$0xff] %vm721_vm3, %v879_v32  ;;  %v2278_v5 = vld [vmem:[#allocation3 + $0x30] sm:$0xff] }
 0x1b7   : > { %v986_v6 = vld [vmem:[#allocation3 + $0x32] sm:$0xff] }
 0x1ba   : > { %v848_v16 = vpop.f32.mrf.mxu3 }
 0x1bb   : > { %v849_v33 = vadd.f32 %v1897_v22, %v848_v16 }
 0x1bd   : > { %vm862_vm15 = vcmp.gt.f32.partialorder %v849_v33, 0.0  ;;  %v872_v34 = vmul.f32 %v867_v25, %v849_v33  ;;  %v2285_v10 = vld [vmem:[#allocation3 + $0x40] sm:$0xff] }
 0x1be   : > { %v1787_v11 = vpack.i.bf16 %v2285_v10, %v2278_v5  ;;  %v963_v13 = vld [vmem:[#allocation3 + $0x42] sm:$0xff] }
 0x1bf   : > { %v880_v35 = vsel %vm862_vm15, %v849_v33, %v872_v34  ;;  %v955_v14 = vld [vmem:[#allocation3 + $0x41] sm:$0xff]  ;;  %v1797_v18 = vpack.i.bf16 %v963_v13, %v986_v6  ;;  %vm1361_vm15 = vcmask 588800  }
 0x1c0   : > { %916 = vst.msk [vmem:[#allocation3 + $0x51] sm:$0xff] %vm721_vm3, %v880_v35  ;;  %v1792_v19 = vpack.i.bf16 %v955_v14, %v978_v4 }
 0x1c2   : > { %v850_v36 = vpop.f32.mrf.mxu3 }
 0x1c3   : > { %v851_v37 = vadd.f32 %v1897_v22, %v850_v36 }
 0x1c5   : > { %vm863_vm0 = vcmp.gt.f32.partialorder %v851_v37, 0.0  ;;  %v873_v39 = vmul.f32 %v867_v25, %v851_v37 }
 0x1c7   : > { %v881_v40 = vsel %vm863_vm0, %v851_v37, %v873_v39  ;;  %v2294_v15 = vld [vmem:[#allocation3 + $0x50] sm:$0xff] }
 0x1c8   : > { %917 = vst.msk [vmem:[#allocation3 + $0x61] sm:$0xff] %vm721_vm3, %v881_v40  ;;  %v941_v21 = vld [vmem:[#allocation3 + $0x52] sm:$0xff] }
 0x1c9   : > { %v984_v37 = vld [vmem:[#allocation3 + $0x91] sm:$0xff] }
 0x1cf   : > { %v2292_v12 = vld [vmem:[#allocation3 + $0x60] sm:$0xff] }
 0x1d0   : > { %v1812_v17 = vpack.i.bf16 %v2292_v12, %v2294_v15  ;;  %v942_v27 = vld [vmem:[#allocation3 + $0x62] sm:$0xff] }
 0x1d1   : > { %v957_v29 = vld [vmem:[#allocation3 + $0x61] sm:$0xff]  ;;  %v1822_v31 = vpack.i.bf16 %v942_v27, %v941_v21 }
 0x1e1   : > { %v853_v50 = vpop.f32.mrf.mxu3 }
 0x1e2   : > { %v854_v41 = vadd.f32 %v1897_v22, %v853_v50  ;;  %v838_v42 = vpop.f32.mrf.mxu0 }
 0x1e3   : > { %v839_v2 = vadd.f32 %v1897_v22, %v838_v42  ;;  %v1882_v42 = vpack.i.bf16 %v2294_v15, %v2285_v10 }
 0x1e4   : > { %vm864_vm2 = vcmp.gt.f32.partialorder %v854_v41, 0.0  ;;  %v874_v61 = vmul.f32 %v867_v25, %v854_v41 }
 0x1e5   : > { %vm858_vm4 = vcmp.gt.f32.partialorder %v839_v2, 0.0  ;;  %v868_v38 = vmul.f32 %v867_v25, %v839_v2 }
 0x1e6   : > { %v882_v44 = vsel %vm864_vm2, %v854_v41, %v874_v61  ;;  %v976_v41 = vld [vmem:[#allocation3 + $0x90] sm:$0xff] }
 0x1e7   : > { %918 = vst.msk [vmem:[#allocation3 + $0x71] sm:$0xff] %vm721_vm3, %v882_v44  ;;  %v876_v46 = vsel %vm858_vm4, %v839_v2, %v868_v38  ;;  %v992_v38 = vld [vmem:[#allocation3 + $0x92] sm:$0xff] }
 0x1e8   : > { %912 = vst.msk [vmem:[#allocation3 + $0x11] sm:$0xff] %vm721_vm3, %v876_v46  ;;  %v1329_v46 = vld [vmem:[%s2472_s4 + $0x20] sm:$0xf] }
 0x1e9   : > { %v855_v45 = vpop.f32.mrf.mxu3 }
 0x1ea   : > { %v856_v47 = vadd.f32 %v1897_v22, %v855_v45  ;;  %v840_v48 = vpop.f32.mrf.mxu0  ;;  %v1351_v45 = vunpack.c.l.b16 %v1329_v46 }
 0x1eb   : > { %v841_v49 = vadd.f32 %v1897_v22, %v840_v48  ;;  %v933_v22 = vld [vmem:[#allocation3 + $0x51] sm:$0xff] }
 0x1ec   : > { %vm865_vm5 = vcmp.gt.f32.partialorder %v856_v47, 0.0  ;;  %v875_v24 = vmul.f32 %v867_v25, %v856_v47  ;;  %v1802_v26 = vpack.i.bf16 %v933_v22, %v955_v14  ;;  %v1817_v32 = vpack.i.bf16 %v957_v29, %v933_v22 }
 0x1ed   : > { %vm859_vm7 = vcmp.gt.f32.partialorder %v841_v49, 0.0  ;;  %v869_v51 = vmul.f32 %v867_v25, %v841_v49  ;;  %v1807_v25 = vpack.i.bf16 %v941_v21, %v963_v13 }
 0x1ee   : > { %v883_v54 = vsel %vm865_vm5, %v856_v47, %v875_v24  ;;  %v2301_v20 = vld [vmem:[#allocation3 + $0x70] sm:$0xff]  ;;  %v1356_v47 = vpack.c.b16 %v1351_v45, %v1351_v45 }
 0x1ef   : > { %919 = vst.msk [vmem:[#allocation3 + $0x81] sm:$0xff] %vm721_vm3, %v883_v54  ;;  %v877_v55 = vsel %vm859_vm7, %v841_v49, %v869_v51  ;;  %v937_v56 = vld [vmem:[#allocation3 + $0x12] sm:$0xff]  ;;  %v1827_v23 = vpack.i.bf16 %v2301_v20, %v2292_v12  ;;  %v1544_v51 = vld [vmem:[%s2472_s4 + $0x8] sm:$0xff] }
 0x1f0   : > { %v929_v57 = vld [vmem:[#allocation3 + $0x11] sm:$0xff]  ;;  %913 = vst.msk [vmem:[#allocation3 + $0x21] sm:$0xff] %vm721_vm3, %v877_v55  ;;  %v1742_v58 = vpack.i.bf16 %v937_v56, %v936_v52  ;;  %v1376_v48 = vsel %vm1374_vm9, %v1356_v47, 0 }
 0x1f1   : > { %v1737_v59 = vpack.i.bf16 %v929_v57, %v928_v53  ;;  %v2269_v60 = vld [vmem:[#allocation3 + $0x10] sm:$0xff]  ;;  %1381 = vmatpush.bf16.msra.mxu1 %v1376_v48  ;;  %v1546_v49 = vld [vmem:[%s2472_s4 + $0x18] sm:$0xff]  ;;  %1550 = vmatpush.bf16.msra.mxu2 %v1376_v48  ;;  %v1543_v53 = vld [vmem:[%s2472_s4] sm:$0xff] }
 0x1f2   : > { %1743 = vrot.lane.b32.xlu0 %v1742_v58, %s1913_s15  ;;  %v943_v28 = vld [vmem:[#allocation3 + $0x72] sm:$0xff] }
 0x1f3   : > { %1738 = vrot.lane.b32.xlu1 %v1737_v59, %s1911_s13  ;;  %v1847_v30 = vpack.i.bf16 %v943_v28, %v942_v27  ;;  %v982_v33 = vld [vmem:[#allocation3 + $0x71] sm:$0xff] }
 0x1f4   : > { %v1832_v35 = vpack.i.bf16 %v982_v33, %v957_v29  ;;  %v1545_v24 = vld [vmem:[%s2472_s4 + $0x10] sm:$0xff] }
 0x1f5   : > { %1382 = vmatpush.bf16.msra.mxu1 %v1546_v49  ;;  %1551 = vmatpush.bf16.msra.mxu2 %v1546_v49 }
 0x1f6   : > { %v967_v16 = vld [vmem:[#allocation3 + $0x82] sm:$0xff] }
 0x1f7   : > { %v2271_v63 = vld [vmem:[#allocation3 + $0x20] sm:$0xff]  ;;  %v1862_v34 = vpack.i.bf16 %v967_v16, %v943_v28  ;;  %v1877_v44 = vpack.i.bf16 %v992_v38, %v967_v16 }
 0x1f8   : > { %v953_v62 = vld [vmem:[#allocation3 + $0x21] sm:$0xff]  ;;  %v1747_v1 = vpack.i.bf16 %v2271_v63, %v2269_v60  ;;  %v1762_v8 = vpack.i.bf16 %v2278_v5, %v2271_v63 }
 0x1f9   : > { %v961_v0 = vld [vmem:[#allocation3 + $0x22] sm:$0xff]  ;;  %v1752_v43 = vpack.i.bf16 %v953_v62, %v929_v57  ;;  %v1767_v7 = vpack.i.bf16 %v978_v4, %v953_v62  ;;  %1383 = vmatpush.bf16.msra.mxu1 %v1545_v24  ;;  %1552 = vmatpush.bf16.msra.mxu2 %v1545_v24 }
 0x1fa   : > { %v1757_v3 = vpack.i.bf16 %v961_v0, %v937_v56  ;;  %1748 = vrot.lane.b32.xlu2 %v1747_v1, %s1912_s14  ;;  %v1772_v9 = vpack.i.bf16 %v986_v6, %v961_v0  ;;  %v983_v36 = vld [vmem:[#allocation3 + $0x81] sm:$0xff] }
 0x1fb   : > { %1753 = vrot.lane.b32.xlu0 %v1752_v43, %s1916_s18  ;;  %v951_v39 = vld [vmem:[#allocation3 + $0x80] sm:$0xff]  ;;  %v1872_v40 = vpack.i.bf16 %v984_v37, %v983_v36  ;;  %v1857_v2 = vpack.i.bf16 %v983_v36, %v982_v33 }
 0x1fc   : > { %1758 = vrot.lane.b32.xlu1 %v1757_v3, %s1917_s3  ;;  %v1852_v50 = vpack.i.bf16 %v951_v39, %v2301_v20  ;;  %v1867_v61 = vpack.i.bf16 %v976_v41, %v951_v39  ;;  %v920_v62 = vld [vmem:[#allocation3] sm:$0xff] }
 0x1fd   : > { %1384 = vmatpush.bf16.msra.mxu1 %v1544_v51  ;;  %1553 = vmatpush.bf16.msra.mxu2 %v1544_v51 }
 0x201   : > { %1385 = vmatpush.bf16.msra.mxu1 %v1543_v53  ;;  %1554 = vmatpush.bf16.msra.mxu2 %v1543_v53 }
 0x202   : > { %1763 = vrot.lane.b32.xlu2 %v1762_v8, %s1919_s30 }
 0x203   : > { %1768 = vrot.lane.b32.xlu0 %v1767_v7, %s1918_s6 }
 0x204   : > { %1773 = vrot.lane.b32.xlu1 %v1772_v9, %s1920_s8 }
 0x20a   : > { %1778 = vrot.lane.b32.xlu2 %v1767_v7, %s1911_s13 }
 0x20b   : > { %1788 = vrot.lane.b32.xlu0 %v1787_v11, %s1912_s14 }
 0x20c   : > { %1783 = vrot.lane.b32.xlu1 %v1772_v9, %s1913_s15 }
 0x212   : > { %1798 = vrot.lane.b32.xlu2 %v1797_v18, %s1917_s3 }
 0x213   : > { %1813 = vrot.lane.b32.xlu0 %v1812_v17, %s1912_s14 }
 0x214   : > { %1793 = vrot.lane.b32.xlu1 %v1792_v19, %s1916_s18 }
 0x21a   : > { %1808 = vrot.lane.b32.xlu2 %v1807_v25, %s1913_s15 }
 0x21b   : > { %1828 = vrot.lane.b32.xlu0 %v1827_v23, %s1919_s30 }
 0x21c   : > { %1803 = vrot.lane.b32.xlu1 %v1802_v26, %s1911_s13 }
 0x222   : > { %1823 = vrot.lane.b32.xlu2 %v1822_v31, %s1917_s3 }
 0x223   : > { %1848 = vrot.lane.b32.xlu0 %v1847_v30, %s1913_s15 }
 0x224   : > { %1818 = vrot.lane.b32.xlu1 %v1817_v32, %s1916_s18 }
 0x22a   : > { %1833 = vrot.lane.b32.xlu2 %v1832_v35, %s1918_s6 }
 0x22b   : > { %1863 = vrot.lane.b32.xlu0 %v1862_v34, %s1917_s3 }
 0x22c   : > { %1838 = vrot.lane.b32.xlu1 %v1847_v30, %s1920_s8 }
 0x232   : > { %1843 = vrot.lane.b32.xlu2 %v1832_v35, %s1911_s13 }
 0x233   : > { %1873 = vrot.lane.b32.xlu0 %v1872_v40, %s1918_s6 }
 0x234   : > { %1853 = vrot.lane.b32.xlu1 %v1852_v50, %s1912_s14 }
 0x23a   : > { %1858 = vrot.lane.b32.xlu2 %v1857_v2, %s1916_s18 }
 0x23b   : > { %1883 = vrot.lane.b32.xlu0 %v1882_v42, %s1919_s30 }
 0x23c   : > { %1868 = vrot.lane.b32.xlu1 %v1867_v61, %s1919_s30 }
 0x242   : > { %1878 = vrot.lane.b32.xlu2 %v1877_v44, %s1920_s8 }
 0x244   : > { %1888 = vrot.lane.b32.xlu1 %v1802_v26, %s1918_s6 }
 0x24a   : > { %1893 = vrot.lane.b32.xlu2 %v1807_v25, %s1920_s8 }
 0x254   : > { %v1749_v52 = vpop.permute.xlu2 %1748 }
 0x255   : > { %v1751_v8 = vunpack.i.h.bf16 %v1749_v52  ;;  %v1750_v9 = vunpack.i.l.bf16 %v1749_v52 }
 0x25c   : > { %v1764_v54 = vpop.permute.xlu2 %1763 }
 0x25d   : > { %v1766_v27 = vunpack.i.h.bf16 %v1764_v54  ;;  %v1765_v28 = vunpack.i.l.bf16 %v1764_v54 }
 0x264   : > { %v1744_v55 = vpop.permute.xlu0 %1743  ;;  %v2341_v59 = vpop.permute.xlu2 %1778 }
 0x265   : > { %v1739_v56 = vpop.permute.xlu1 %1738  ;;  %v1746_v0 = vunpack.i.h.bf16 %v1744_v55  ;;  %v1745_v1 = vunpack.i.l.bf16 %v1744_v55 }
 0x266   : > { %v1741_v57 = vunpack.i.h.bf16 %v1739_v56  ;;  %v1740_v58 = vunpack.i.l.bf16 %v1739_v56 }
 0x268   : > { %v1249_v43 = vsel %vm721_vm3, %v920_v62, %v1740_v58  ;;  %v1250_v3 = vsel %vm721_vm3, %v2269_v60, %v1741_v57 }
 0x269   : > { %v1257_v4 = vsel %vm739_vm6, %v1249_v43, %v1745_v1  ;;  %v1258_v6 = vsel %vm739_vm6, %v1250_v3, %v1746_v0 }
 0x26a   : > { %v1265_v18 = vsel %vm757_vm8, %v1257_v4, %v1750_v9  ;;  %v1266_v19 = vsel %vm757_vm8, %v1258_v6, %v1751_v8 }
 0x26c   : > { %v2348_v17 = vpop.permute.xlu2 %1798 }
 0x26d   : > { %v1754_v7 = vpop.permute.xlu0 %1753 }
 0x26e   : > { %v1756_v11 = vunpack.i.h.bf16 %v1754_v7  ;;  %v1755_v13 = vunpack.i.l.bf16 %v1754_v7  ;;  %v1759_v14 = vpop.permute.xlu1 %1758 }
 0x26f   : > { %v1761_v21 = vunpack.i.h.bf16 %v1759_v14  ;;  %v1760_v22 = vunpack.i.l.bf16 %v1759_v14 }
 0x270   : > { %v1273_v60 = vsel %vm775_vm10, %v1265_v18, %v1755_v13  ;;  %v1274_v23 = vsel %vm775_vm10, %v1266_v19, %v1756_v11 }
 0x271   : > { %v1282_v25 = vsel %vm1281_vm11, %v1273_v60, %v1760_v22  ;;  %v1283_v26 = vsel %vm1281_vm11, %v1274_v23, %v1761_v21 }
 0x272   : > { %v1291_v34 = vsel %vm1290_vm12, %v1282_v25, %v1765_v28  ;;  %v1292_v35 = vsel %vm1290_vm12, %v1283_v26, %v1766_v27  ;;  %v1781_v26 = vunpack.i.h.bf16 %v2341_v59  ;;  %v1780_v27 = vunpack.i.l.bf16 %v2341_v59 }
 0x274   : > { %v1809_v39 = vpop.permute.xlu2 %1808  ;;  %v1252_v59 = vsel %vm721_vm3, %v2278_v5, %v1781_v26 }
 0x275   : > { %v1769_v29 = vpop.permute.xlu0 %1768  ;;  %v1811_v52 = vunpack.i.h.bf16 %v1809_v39  ;;  %v1810_v53 = vunpack.i.l.bf16 %v1809_v39 }
 0x276   : > { %v1774_v30 = vpop.permute.xlu1 %1773  ;;  %v1771_v31 = vunpack.i.h.bf16 %v1769_v29  ;;  %v1770_v32 = vunpack.i.l.bf16 %v1769_v29 }
 0x277   : > { %v1776_v16 = vunpack.i.h.bf16 %v1774_v30  ;;  %v1775_v33 = vunpack.i.l.bf16 %v1774_v30 }
 0x278   : > { %v1300_v36 = vsel %vm1299_vm13, %v1291_v34, %v1770_v32  ;;  %v1301_v37 = vsel %vm1299_vm13, %v1292_v35, %v1771_v31  ;;  %v1251_v35 = vsel %vm721_vm3, %v2271_v63, %v1780_v27 }
 0x279   : > { %v1309_v40 = vsel %vm1308_vm14, %v1300_v36, %v1775_v33  ;;  %v1310_v50 = vsel %vm1308_vm14, %v1301_v37, %v1776_v16 }
 0x27a   : > { %v1317_v41 = vpack.c.bf16 %v1310_v50, %v1309_v40 }
 0x27c   : > { %1534 = vmatmul.msk.bf16.vlgmr.msra.gmra.mxu1 %vm1361_vm15, %v1317_v41  ;;  %v1824_v61 = vpop.permute.xlu2 %1823 }
 0x27d   : > { %v2363_v42 = vpop.permute.xlu0 %1788  ;;  %v1826_v3 = vunpack.i.h.bf16 %v1824_v61  ;;  %v1825_v4 = vunpack.i.l.bf16 %v1824_v61 }
 0x27e   : > { %v2365_v2 = vpop.permute.xlu1 %1783  ;;  %v1791_v39 = vunpack.i.h.bf16 %v2363_v42  ;;  %v1790_v40 = vunpack.i.l.bf16 %v2363_v42 }
 0x27f   : > { %v1786_v16 = vunpack.i.h.bf16 %v2365_v2  ;;  %v1785_v33 = vunpack.i.l.bf16 %v2365_v2 }
 0x281   : > { %v1259_v2 = vsel %vm739_vm6, %v1251_v35, %v1785_v33 }
 0x284   : > { %v1834_v46 = vpop.permute.xlu2 %1833 }
 0x285   : > { %v1814_v38 = vpop.permute.xlu0 %1813  ;;  %v1836_v21 = vunpack.i.h.bf16 %v1834_v46  ;;  %v1835_v22 = vunpack.i.l.bf16 %v1834_v46 }
 0x286   : > { %v2367_v44 = vpop.permute.xlu1 %1793  ;;  %v1816_v57 = vunpack.i.h.bf16 %v1814_v38  ;;  %v1815_v58 = vunpack.i.l.bf16 %v1814_v38  ;;  %v1260_v38 = vsel %vm739_vm6, %v1252_v59, %v1786_v16 }
 0x287   : > { %v1796_v63 = vunpack.i.h.bf16 %v2367_v44  ;;  %v1795_v46 = vunpack.i.l.bf16 %v2367_v44 }
 0x28c   : > { %v1844_v0 = vpop.permute.xlu2 %1843 }
 0x28d   : > { %v1829_v45 = vpop.permute.xlu0 %1828  ;;  %v1846_v36 = vunpack.i.h.bf16 %v1844_v0  ;;  %v1845_v37 = vunpack.i.l.bf16 %v1844_v0 }
 0x28e   : > { %v1804_v47 = vpop.permute.xlu1 %1803  ;;  %v1831_v11 = vunpack.i.h.bf16 %v1829_v45  ;;  %v1830_v13 = vunpack.i.l.bf16 %v1829_v45 }
 0x28f   : > { %v1806_v48 = vunpack.i.h.bf16 %v1804_v47  ;;  %v1805_v49 = vunpack.i.l.bf16 %v1804_v47  ;;  %v1255_v42 = vsel %vm721_vm3, %v2292_v12, %v1845_v37  ;;  %v1800_v12 = vunpack.i.l.bf16 %v2348_v17 }
 0x291   : > { %v1254_v24 = vsel %vm721_vm3, %v2294_v15, %v1806_v48  ;;  %v1253_v51 = vsel %vm721_vm3, %v2285_v10, %v1805_v49  ;;  %v1256_v48 = vsel %vm721_vm3, %v2301_v20, %v1846_v36  ;;  %v1267_v49 = vsel %vm757_vm8, %v1259_v2, %v1790_v40  ;;  %v1898_v40 = vld [vmem:[%s2473_s5] ss:$0 sm:$0xff] }
 0x292   : > { %v1261_v54 = vsel %vm739_vm6, %v1253_v51, %v1810_v53  ;;  %v1262_v55 = vsel %vm739_vm6, %v1254_v24, %v1811_v52  ;;  %v1268_v24 = vsel %vm757_vm8, %v1260_v38, %v1791_v39  ;;  %v1275_v53 = vsel %vm775_vm10, %v1267_v49, %v1795_v46 }
 0x293   : > { %v1269_v15 = vsel %vm757_vm8, %v1261_v54, %v1815_v58  ;;  %v1270_v6 = vsel %vm757_vm8, %v1262_v55, %v1816_v57  ;;  %v1276_v44 = vsel %vm775_vm10, %v1268_v24, %v1796_v63  ;;  %v1801_v20 = vunpack.i.h.bf16 %v2348_v17 }
 0x294   : > { %v1859_v30 = vpop.permute.xlu2 %1858 }
 0x295   : > { %v1849_v56 = vpop.permute.xlu0 %1848  ;;  %v1860_v57 = vunpack.i.l.bf16 %v1859_v30 }
 0x296   : > { %v1819_v62 = vpop.permute.xlu1 %1818  ;;  %v1851_v50 = vunpack.i.h.bf16 %v1849_v56  ;;  %v1850_v41 = vunpack.i.l.bf16 %v1849_v56  ;;  %v1861_v56 = vunpack.i.h.bf16 %v1859_v30 }
 0x297   : > { %v1821_v1 = vunpack.i.h.bf16 %v1819_v62  ;;  %v1820_v43 = vunpack.i.l.bf16 %v1819_v62 }
 0x298   : > { %v1263_v51 = vsel %vm739_vm6, %v1255_v42, %v1850_v41  ;;  %v1264_v52 = vsel %vm739_vm6, %v1256_v48, %v1851_v50  ;;  %v1416_v41 = vstv %s1415_s20 }
 0x299   : > { %v1277_v10 = vsel %vm775_vm10, %v1269_v15, %v1820_v43  ;;  %v1278_v7 = vsel %vm775_vm10, %v1270_v6, %v1821_v1  ;;  %v1284_v43 = vsel %vm1281_vm11, %v1275_v53, %v1800_v12 }
 0x29a   : > { %v1286_v8 = vsel %vm1281_vm11, %v1277_v10, %v1825_v4  ;;  %v1287_v9 = vsel %vm1281_vm11, %v1278_v7, %v1826_v3  ;;  %v1285_v3 = vsel %vm1281_vm11, %v1276_v44, %v1801_v20 }
 0x29b   : > { %v1295_v18 = vsel %vm1290_vm12, %v1286_v8, %v1830_v13  ;;  %v1296_v19 = vsel %vm1290_vm12, %v1287_v9, %v1831_v11 }
 0x29c   : > { %v1304_v28 = vsel %vm1299_vm13, %v1295_v18, %v1835_v22  ;;  %v1305_v29 = vsel %vm1299_vm13, %v1296_v19, %v1836_v21  ;;  %v1879_v58 = vpop.permute.xlu2 %1878 }
 0x29d   : > { %v2381_v14 = vpop.permute.xlu0 %1863  ;;  %v1881_v22 = vunpack.i.h.bf16 %v1879_v58 }
 0x29e   : > { %v1839_v60 = vpop.permute.xlu1 %1838  ;;  %v1866_v4 = vunpack.i.h.bf16 %v2381_v14  ;;  %v1865_v15 = vunpack.i.l.bf16 %v2381_v14 }
 0x29f   : > { %v1841_v23 = vunpack.i.h.bf16 %v1839_v60  ;;  %v1840_v25 = vunpack.i.l.bf16 %v1839_v60  ;;  %v1880_v60 = vunpack.i.l.bf16 %v1879_v58 }
 0x2a1   : > { %v1313_v31 = vsel %vm1308_vm14, %v1304_v28, %v1840_v25  ;;  %v1314_v32 = vsel %vm1308_vm14, %v1305_v29, %v1841_v23 }
 0x2a2   : > { %v1319_v34 = vpack.c.bf16 %v1314_v32, %v1313_v31 }
 0x2a4   : > { %1536 = vmatmul.msk.bf16.vlgmr.msra.gmra.mxu2 %vm1361_vm15, %v1319_v34  ;;  %v1894_v30 = vpop.permute.xlu2 %1893 }
 0x2a5   : > { %v1874_v61 = vpop.permute.xlu0 %1873  ;;  %v1896_v33 = vunpack.i.h.bf16 %v1894_v30  ;;  %v1895_v34 = vunpack.i.l.bf16 %v1894_v30 }
 0x2a6   : > { %v1854_v5 = vpop.permute.xlu1 %1853  ;;  %v1876_v17 = vunpack.i.h.bf16 %v1874_v61  ;;  %v1875_v8 = vunpack.i.l.bf16 %v1874_v61 }
 0x2a7   : > { %v1856_v45 = vunpack.i.h.bf16 %v1854_v5  ;;  %v1855_v47 = vunpack.i.l.bf16 %v1854_v5 }
 0x2a9   : > { %v1271_v54 = vsel %vm757_vm8, %v1263_v51, %v1855_v47  ;;  %v1272_v55 = vsel %vm757_vm8, %v1264_v52, %v1856_v45 }
 0x2aa   : > { %v1279_v62 = vsel %vm775_vm10, %v1271_v54, %v1860_v57  ;;  %v1280_v0 = vsel %vm775_vm10, %v1272_v55, %v1861_v56 }
 0x2ab   : > { %v1288_v19 = vsel %vm1281_vm11, %v1279_v62, %v1865_v15  ;;  %v1289_v21 = vsel %vm1281_vm11, %v1280_v0, %v1866_v4 }
 0x2ad   : > { %v1884_v1 = vpop.permute.xlu0 %1883 }
 0x2ae   : > { %v1886_v6 = vunpack.i.h.bf16 %v1884_v1  ;;  %v1885_v10 = vunpack.i.l.bf16 %v1884_v1  ;;  %v1869_v7 = vpop.permute.xlu1 %1868 }
 0x2af   : > { %v1871_v9 = vunpack.i.h.bf16 %v1869_v7  ;;  %v1870_v11 = vunpack.i.l.bf16 %v1869_v7 }
 0x2b0   : > { %v1293_v13 = vsel %vm1290_vm12, %v1284_v43, %v1885_v10  ;;  %v1294_v18 = vsel %vm1290_vm12, %v1285_v3, %v1886_v6 }
 0x2b1   : > { %v1297_v23 = vsel %vm1290_vm12, %v1288_v19, %v1870_v11  ;;  %v1298_v14 = vsel %vm1290_vm12, %v1289_v21, %v1871_v9 }
 0x2b2   : > { %v1306_v25 = vsel %vm1299_vm13, %v1297_v23, %v1875_v8  ;;  %v1307_v26 = vsel %vm1299_vm13, %v1298_v14, %v1876_v17 }
 0x2b3   : > { %v1315_v27 = vsel %vm1308_vm14, %v1306_v25, %v1880_v60  ;;  %v1316_v28 = vsel %vm1308_vm14, %v1307_v26, %v1881_v22 }
 0x2b4   : > { %v1320_v29 = vpack.c.bf16 %v1316_v28, %v1315_v27 }
 0x2b6   : > { %v1889_v31 = vpop.permute.xlu1 %1888  ;;  %1537 = vmatmul.msk.bf16.gmra.mxu2 %vm1361_vm15, %v1320_v29 }
 0x2b7   : > { %v1891_v32 = vunpack.i.h.bf16 %v1889_v31  ;;  %v1890_v16 = vunpack.i.l.bf16 %v1889_v31 }
 0x2b9   : > { %v1302_v35 = vsel %vm1299_vm13, %v1293_v13, %v1890_v16  ;;  %v1303_v59 = vsel %vm1299_vm13, %v1294_v18, %v1891_v32 }
 0x2ba   : > { %v1311_v36 = vsel %vm1308_vm14, %v1302_v35, %v1895_v34  ;;  %v1312_v37 = vsel %vm1308_vm14, %v1303_v59, %v1896_v33 }
 0x2bb   : > { %v1318_v39 = vpack.c.bf16 %v1312_v37, %v1311_v36 }
 0x2bd   : > { %1535 = vmatmul.msk.bf16.gmra.mxu1 %vm1361_vm15, %v1318_v39 }
 0x2f9   : > { %v1387_v50 = vpop.f32.mrf.mxu1 }
 0x2fa   : > { %v1388_v61 = vadd.f32 %v1898_v40, %v1387_v50 }
 0x2fc   : > { %vm1407_vm6 = vcmp.gt.f32.partialorder %v1388_v61, 0.0  ;;  %v1417_v2 = vmul.f32 %v1416_v41, %v1388_v61 }
 0x2fe   : > { %v1425_v38 = vsel %vm1407_vm6, %v1388_v61, %v1417_v2 }
 0x2ff   : > { %1433 = vst.msk [vmem:[%s2447_s26] sm:$0xff] %vm721_vm3, %v1425_v38 }
 0x301   : > { %v1389_v63 = vpop.f32.mrf.mxu1 }
 0x302   : > { %v1390_v46 = vadd.f32 %v1898_v40, %v1389_v63 }
 0x304   : > { %vm1408_vm8 = vcmp.gt.f32.partialorder %v1390_v46, 0.0  ;;  %v1418_v5 = vmul.f32 %v1416_v41, %v1390_v46 }
 0x306   : > { %v1426_v45 = vsel %vm1408_vm8, %v1390_v46, %v1418_v5 }
 0x307   : > { %1434 = vst.msk [vmem:[%s2447_s26 + $0x8] sm:$0xff] %vm721_vm3, %v1426_v45 }
 0x327   : > { %v1397_v47 = vpop.f32.mrf.mxu2 }
 0x328   : > { %v1398_v48 = vadd.f32 %v1898_v40, %v1397_v47 }
 0x32a   : > { %vm1411_vm10 = vcmp.gt.f32.partialorder %v1398_v48, 0.0  ;;  %v1421_v42 = vmul.f32 %v1416_v41, %v1398_v48 }
 0x32c   : > { %v1429_v49 = vsel %vm1411_vm10, %v1398_v48, %v1421_v42 }
 0x32d   : > { %1437 = vst.msk [vmem:[%s2447_s26 + $0x20] sm:$0xff] %vm721_vm3, %v1429_v49 }
 0x32f   : > { %v1399_v24 = vpop.f32.mrf.mxu2 }
 0x330   : > { %v1400_v51 = vadd.f32 %v1898_v40, %v1399_v24 }
 0x332   : > { %vm1412_vm0 = vcmp.gt.f32.partialorder %v1400_v51, 0.0  ;;  %v1422_v52 = vmul.f32 %v1416_v41, %v1400_v51 }
 0x334   : > { %v1430_v53 = vsel %vm1412_vm0, %v1400_v51, %v1422_v52 }
 0x335   : > { %1438 = vst.msk [vmem:[%s2447_s26 + $0x28] sm:$0xff] %vm721_vm3, %v1430_v53 }
 0x339   : > { %v1402_v44 = vpop.f32.mrf.mxu2 }
 0x33a   : > { %v1403_v54 = vadd.f32 %v1898_v40, %v1402_v44  ;;  %v1392_v55 = vpop.f32.mrf.mxu1 }
 0x33b   : > { %v1393_v20 = vadd.f32 %v1898_v40, %v1392_v55 }
 0x33c   : > { %vm1413_vm1 = vcmp.gt.f32.partialorder %v1403_v54, 0.0  ;;  %v1423_v12 = vmul.f32 %v1416_v41, %v1403_v54 }
 0x33d   : > { %vm1409_vm2 = vcmp.gt.f32.partialorder %v1393_v20, 0.0  ;;  %v1419_v56 = vmul.f32 %v1416_v41, %v1393_v20 }
 0x33e   : > { %v1431_v57 = vsel %vm1413_vm1, %v1403_v54, %v1423_v12 }
 0x33f   : > { %1439 = vst.msk [vmem:[%s2447_s26 + $0x30] sm:$0xff] %vm721_vm3, %v1431_v57  ;;  %v1427_v58 = vsel %vm1409_vm2, %v1393_v20, %v1419_v56 }
 0x340   : > { %1435 = vst.msk [vmem:[%s2447_s26 + $0x10] sm:$0xff] %vm721_vm3, %v1427_v58 }
 0x341   : > { %v1404_v62 = vpop.f32.mrf.mxu2 }
 0x342   : > { %v1405_v0 = vadd.f32 %v1898_v40, %v1404_v62  ;;  %v1394_v1 = vpop.f32.mrf.mxu1 }
 0x343   : > { %v1395_v43 = vadd.f32 %v1898_v40, %v1394_v1 }
 0x344   : > { %vm1414_vm4 = vcmp.gt.f32.partialorder %v1405_v0, 0.0  ;;  %v1424_v3 = vmul.f32 %v1416_v41, %v1405_v0 }
 0x345   : > { %vm1410_vm5 = vcmp.gt.f32.partialorder %v1395_v43, 0.0  ;;  %v1420_v4 = vmul.f32 %v1416_v41, %v1395_v43 }
 0x346   : > { %v1432_v15 = vsel %vm1414_vm4, %v1405_v0, %v1424_v3 }
 0x347   : > { %1440 = vst.msk [vmem:[%s2447_s26 + $0x38] sm:$0xff] %vm721_vm3, %v1432_v15  ;;  %v1428_v6 = vsel %vm1410_vm5, %v1395_v43, %v1420_v4 }
 0x348   : > { %1436 = vst.msk [vmem:[%s2447_s26 + $0x18] sm:$0xff] %vm721_vm3, %v1428_v6 }
 0x349 PF: > { %s19_s28 = sadd.s32 1, %s1905_s28  }
 0x34a   : > { %p16_p5 = scmp.ge.s32.totalorder %s19_s28, 4  }
 0x34c   :  { %18 = sbr.rel (!%p16_p5) target bundleno = 3 (0x3), region = 84 }

</bundles_post_ra>
